<compile_context>
chip_gen: v6e
topology: v6e:2x2x1
jax: 0.10.0
libtpu: 0.0.40
codegen_flags: <defaults>
</compile_context>

<pallas_src>
import functools

import jax
import jax.numpy as jnp
from jax.experimental import pallas as pl
from jax.experimental.pallas import tpu as pltpu


def _round_up(x, m):
    return ((x + m - 1) // m) * m


def _pick_tile(n_pad, max_tile=512):
    # n_pad is always a multiple of 128; pick the largest tile <= max_tile dividing it.
    for t in (512, 384, 256, 128):
        if t <= max_tile and n_pad % t == 0:
            return t
    return 128


# ---------------------------------------------------------------------------
# Kernels
# ---------------------------------------------------------------------------

def _feat_transform_kernel(h_ref, dsrc_ref, w_ref, o_ref):
    # o = (D_src^{-1/2} H)_tile @ W   (pre-multiply association, F_out < F_in)
    hs = (h_ref[...].astype(jnp.float32) * dsrc_ref[...]).astype(jnp.bfloat16)
    o_ref[...] = jnp.dot(
        hs, w_ref[...], preferred_element_type=jnp.float32
    ).astype(o_ref.dtype)


def _aggregate_post_w_kernel(a_ref, h_ref, dsrc_ref, ddst_ref, w_ref, b_ref,
                             o_ref, acc_ref, *, apply_relu):
    # out_tile = act( (D_dst^{-1/2} * sum_k A[i,k] @ (D_src^{-1/2} H)[k]) @ W + b )
    k = pl.program_id(1)

    @pl.when(k == 0)
    def _init():
        acc_ref[...] = jnp.zeros_like(acc_ref)

    hs = (h_ref[...].astype(jnp.float32) * dsrc_ref[...]).astype(jnp.bfloat16)
    acc_ref[...] += jnp.dot(a_ref[...], hs, preferred_element_type=jnp.float32)

    @pl.when(k == pl.num_programs(1) - 1)
    def _finish():
        agg = (acc_ref[...] * ddst_ref[...]).astype(jnp.bfloat16)
        out = jnp.dot(agg, w_ref[...], preferred_element_type=jnp.float32)
        out = out + b_ref[...]
        if apply_relu:
            out = jnp.maximum(out, 0.0)
        o_ref[...] = out.astype(o_ref.dtype)


def _aggregate_kernel(a_ref, xw_ref, ddst_ref, b_ref, o_ref, acc_ref, *, apply_relu):
    # out_tile = act( D_dst^{-1/2} * (sum_k A[i,k] @ XW[k]) + b )   (F_out < F_in path)
    k = pl.program_id(1)

    @pl.when(k == 0)
    def _init():
        acc_ref[...] = jnp.zeros_like(acc_ref)

    acc_ref[...] += jnp.dot(a_ref[...], xw_ref[...], preferred_element_type=jnp.float32)

    @pl.when(k == pl.num_programs(1) - 1)
    def _finish():
        out = acc_ref[...] * ddst_ref[...] + b_ref[...]
        if apply_relu:
            out = jnp.maximum(out, 0.0)
        o_ref[...] = out.astype(o_ref.dtype)


# ---------------------------------------------------------------------------
# Per-layer wrapper
# ---------------------------------------------------------------------------

def gcn_layer(a_pad, d_src, d_dst, h, w, b, *, apply_relu, out_dtype, max_tile=512):
    """One GraphConv(norm='both') layer on padded inputs.

    a_pad: (N_pad, N_pad) bf16 raw adjacency (A[dst, src])
    d_src: (N_pad, 1)     f32  out-degree^{-1/2} (src scaling)
    d_dst: (N_pad, 1)     f32  in-degree^{-1/2}  (dst scaling)
    h:     (N_pad, F_in_pad) bf16 node features
    w:     (F_in_pad, F_out_pad) bf16 weight
    b:     (F_out_pad,) f32 bias
    """
    n_pad = a_pad.shape[0]
    f_in_pad, f_out_pad = w.shape
    tm = _pick_tile(n_pad, max_tile)
    tk = _pick_tile(n_pad, max_tile)
    grid = (n_pad // tm, n_pad // tk)
    b2 = b.reshape(1, f_out_pad)

    if f_out_pad >= f_in_pad:
        # (A @ H) @ W — accumulate A@H, apply W/dst-norm/bias/ReLU only in the epilogue.
        kernel = functools.partial(_aggregate_post_w_kernel, apply_relu=apply_relu)
        return pl.pallas_call(
            kernel,
            out_shape=jax.ShapeDtypeStruct((n_pad, f_out_pad), out_dtype),
            grid=grid,
            in_specs=[
                pl.BlockSpec((tm, tk), lambda i, k: (i, k)),
                pl.BlockSpec((tk, f_in_pad), lambda i, k: (k, 0)),
                pl.BlockSpec((tk, 1), lambda i, k: (k, 0)),
                pl.BlockSpec((tm, 1), lambda i, k: (i, 0)),
                pl.BlockSpec((f_in_pad, f_out_pad), lambda i, k: (0, 0)),
                pl.BlockSpec((1, f_out_pad), lambda i, k: (0, 0)),
            ],
            out_specs=pl.BlockSpec((tm, f_out_pad), lambda i, k: (i, 0)),
            scratch_shapes=[pltpu.VMEM((tm, f_in_pad), jnp.float32)],
            compiler_params=pltpu.CompilerParams(
                dimension_semantics=("parallel", "arbitrary")),
        )(a_pad, h, d_src, d_dst, w, b2)

    # F_out < F_in: reassociate as A @ ((D_src^{-1/2} H) @ W) — cheap row-tiled transform
    # first, then the N^2 contraction on the narrower matrix (matches DGL's own ordering).
    xw = pl.pallas_call(
        _feat_transform_kernel,
        out_shape=jax.ShapeDtypeStruct((n_pad, f_out_pad), jnp.bfloat16),
        grid=(n_pad // tm,),
        in_specs=[
            pl.BlockSpec((tm, f_in_pad), lambda i: (i, 0)),
            pl.BlockSpec((tm, 1), lambda i: (i, 0)),
            pl.BlockSpec((f_in_pad, f_out_pad), lambda i: (0, 0)),
        ],
        out_specs=pl.BlockSpec((tm, f_out_pad), lambda i: (i, 0)),
        compiler_params=pltpu.CompilerParams(dimension_semantics=("parallel",)),
    )(h, d_src, w)

    kernel = functools.partial(_aggregate_kernel, apply_relu=apply_relu)
    return pl.pallas_call(
        kernel,
        out_shape=jax.ShapeDtypeStruct((n_pad, f_out_pad), out_dtype),
        grid=grid,
        in_specs=[
            pl.BlockSpec((tm, tk), lambda i, k: (i, k)),
            pl.BlockSpec((tk, f_out_pad), lambda i, k: (k, 0)),
            pl.BlockSpec((tm, 1), lambda i, k: (i, 0)),
            pl.BlockSpec((1, f_out_pad), lambda i, k: (0, 0)),
        ],
        out_specs=pl.BlockSpec((tm, f_out_pad), lambda i, k: (i, 0)),
        scratch_shapes=[pltpu.VMEM((tm, f_out_pad), jnp.float32)],
        compiler_params=pltpu.CompilerParams(
            dimension_semantics=("parallel", "arbitrary")),
    )(a_pad, xw, d_dst, b2)


# ---------------------------------------------------------------------------
# Full forward
# ---------------------------------------------------------------------------

def gcn_forward(adj, features, params, *, encoder_mode=False, max_tile=512):
    """Forward pass of GCN (return_all=False -> last layer output).

    adj:      (N, N) float32 dense adjacency, adj[dst, src] = 1.0 if edge src->dst.
    features: (N, in_feats) float32.
    params:   list of (W, b) per layer, W: (f_in, f_out) f32, b: (f_out,) f32.
    """
    n = adj.shape[0]
    in_feats = features.shape[1]

    # DGL GraphConv norm='both': src features scaled by out_deg^{-1/2}, aggregated
    # result scaled by in_deg^{-1/2}; degrees clamped to >= 1
    # (allow_zero_in_degree=True just disables the error check).
    d_src = jnp.maximum(jnp.sum(adj, axis=0), 1.0) ** -0.5  # per src node (out-degree)
    d_dst = jnp.maximum(jnp.sum(adj, axis=1), 1.0) ** -0.5  # per dst node (in-degree)

    # Pad nodes / feature lanes to multiples of 128, cast MXU operands to bf16.
    n_pad = _round_up(n, 128)
    pad_n = n_pad - n
    a_pad = jnp.pad(adj, ((0, pad_n), (0, pad_n))).astype(jnp.bfloat16)
    d_src = jnp.pad(d_src, (0, pad_n), constant_values=1.0).reshape(n_pad, 1).astype(jnp.float32)
    d_dst = jnp.pad(d_dst, (0, pad_n), constant_values=1.0).reshape(n_pad, 1).astype(jnp.float32)

    f_in_pad = _round_up(in_feats, 128)
    h = jnp.pad(
        features, ((0, pad_n), (0, f_in_pad - in_feats))
    ).astype(jnp.bfloat16)

    n_layers = len(params)
    f_out_real = in_feats
    for i, (w, b) in enumerate(params):
        f_in, f_out = w.shape
        f_in_p = _round_up(f_in, 128)
        f_out_p = _round_up(f_out, 128)
        w_p = jnp.pad(w, ((0, f_in_p - f_in), (0, f_out_p - f_out))).astype(jnp.bfloat16)
        b_p = jnp.pad(b, (0, f_out_p - f_out)).astype(jnp.float32)

        last = (i == n_layers - 1)
        apply_relu = (not last) or encoder_mode   # norm='identity' then ReLU
        out_dtype = jnp.float32 if last else jnp.bfloat16
        # dropout before every layer except the first -> identity at inference.
        h = gcn_layer(a_pad, d_src, d_dst, h, w_p, b_p, apply_relu=apply_relu,
                      out_dtype=out_dtype, max_tile=max_tile)
        f_out_real = f_out

    return h[:n, :f_out_real]


def gcn_reference(adj, features, params, *, encoder_mode=False):
    """Pure-JAX f32 reference for validation."""
    d_src = jnp.maximum(jnp.sum(adj, axis=0), 1.0) ** -0.5
    d_dst = jnp.maximum(jnp.sum(adj, axis=1), 1.0) ** -0.5
    h = features
    n_layers = len(params)
    for i, (w, b) in enumerate(params):
        agg = adj @ (h * d_src[:, None])
        out = (agg * d_dst[:, None]) @ w + b
        if (i != n_layers - 1) or encoder_mode:
            out = jnp.maximum(out, 0.0)
        h = out
    return h


def init_gcn_params(key, in_feats, hidden_lst):
    """Deterministic Glorot-style init matching GraphConv(in_, out_, bias=True) shapes."""
    dims = [in_feats] + list(hidden_lst)
    params = []
    for f_in, f_out in zip(dims[:-1], dims[1:]):
        key, wk = jax.random.split(key)
        scale = jnp.sqrt(2.0 / (f_in + f_out)).astype(jnp.float32)
        w = jax.random.normal(wk, (f_in, f_out), dtype=jnp.float32) * scale
        b = jnp.zeros((f_out,), dtype=jnp.float32)  # DGL initializes bias to zeros
        params.append((w, b))
    return params


if __name__ == "__main__":
    key = jax.random.PRNGKey(0)
    k_adj, k_feat, k_param = jax.random.split(key, 3)

    N = 256            # number of nodes
    IN_FEATS = 256     # > first hidden dim -> exercises the pre-multiply (A @ (HW)) path
    HIDDEN = [64, 16]  # two GraphConv layers; n_classes = 16 (second layer: post-W path)

    # Synthetic sparse-ish graph as a dense adjacency matrix.
    adj = (jax.random.uniform(k_adj, (N, N)) < 0.1).astype(jnp.float32)
    features = jax.random.normal(k_feat, (N, IN_FEATS), dtype=jnp.float32)

    params = init_gcn_params(k_param, IN_FEATS, HIDDEN)

    fwd = jax.jit(lambda a, x, p: gcn_forward(a, x, p))
    out = fwd(adj, features, params)
    out = jax.block_until_ready(out)
    assert out.shape == (N, HIDDEN[-1]) and out.dtype == jnp.float32

    # Loose numerical check vs. f32 reference (kernels run MXU in bf16).
    ref = gcn_reference(adj, features, params)
    rel_err = jnp.linalg.norm(out - ref) / (jnp.linalg.norm(ref) + 1e-6)
    assert float(rel_err) < 3e-2, f"relative error too high: {float(rel_err)}"

    print("KERNEL_OK")
</pallas_src>

<mosaic_0001>
module attributes {stable_mosaic.version = 11 : i64} {
  func.func @_feat_transform_kernel(%arg0: i32, %arg1: memref<256x256xbf16, #tpu.memory_space<vmem>>, %arg2: memref<256x1xf32, #tpu.memory_space<vmem>>, %arg3: memref<256x128xbf16, #tpu.memory_space<vmem>>, %arg4: memref<256x128xbf16, #tpu.memory_space<vmem>>) attributes {dimension_semantics = [#tpu.dimension_semantics<parallel>], iteration_bounds = array<i64: 1>, scalar_prefetch = 0 : i64, scratch_operands = 0 : i64, tpu.core_type = #tpu.core_type<tc>, window_params = [{transform_indices = @transform_0, window_bounds = array<i64: 256, 256>}, {transform_indices = @transform_1, window_bounds = array<i64: 256, 1>}, {pipeline_mode = #tpu.pipeline_mode<synchronous>, transform_indices = @transform_2, window_bounds = array<i64: 256, 128>}, {transform_indices = @transform_3, window_bounds = array<i64: 256, 128>}]} {
    %c0 = arith.constant 0 : index
    %c0_0 = arith.constant 0 : index
    %0 = vector.load %arg1[%c0, %c0_0] : memref<256x256xbf16, #tpu.memory_space<vmem>>, vector<256x256xbf16>
    %1 = arith.extf %0 : vector<256x256xbf16> to vector<256x256xf32>
    %c0_1 = arith.constant 0 : index
    %c0_2 = arith.constant 0 : index
    %2 = vector.load %arg2[%c0_1, %c0_2] : memref<256x1xf32, #tpu.memory_space<vmem>>, vector<256x1xf32>
    %3 = vector.broadcast %2 : vector<256x1xf32> to vector<256x256xf32>
    %4 = arith.mulf %1, %3 : vector<256x256xf32>
    %5 = arith.truncf %4 : vector<256x256xf32> to vector<256x256xbf16>
    %c0_3 = arith.constant 0 : index
    %c0_4 = arith.constant 0 : index
    %6 = vector.load %arg3[%c0_3, %c0_4] : memref<256x128xbf16, #tpu.memory_space<vmem>>, vector<256x128xbf16>
    %cst = arith.constant dense<0.000000e+00> : vector<256x128xf32>
    %7 = tpu.matmul %5, %6, %cst {dimension_numbers = #tpu.dot_dimension_numbers<[1], [0], [0], [1], [0, 0, 1, 1], [], []>} : vector<256x256xbf16>, vector<256x128xbf16>, vector<256x128xf32> -> vector<256x128xf32>
    %8 = arith.truncf %7 : vector<256x128xf32> to vector<256x128xbf16>
    %c0_5 = arith.constant 0 : index
    %c0_6 = arith.constant 0 : index
    %9 = vector.load %arg4[%c0_5, %c0_6] : memref<256x128xbf16, #tpu.memory_space<vmem>>, vector<256x128xbf16>
    tpu.vector_store %arg4[%c0_5, %c0_6], %8 {strides = array<i32>} : memref<256x128xbf16, #tpu.memory_space<vmem>>, vector<256x128xbf16>,
    return
  }
  func.func @transform_0(%arg0: i32) -> (i32, i32) {
    %c0_i32 = arith.constant 0 : i32
    %c0_i32_0 = arith.constant 0 : i32
    return %arg0, %c0_i32 : i32, i32
  }
  func.func @transform_1(%arg0: i32) -> (i32, i32) {
    %c0_i32 = arith.constant 0 : i32
    %c0_i32_0 = arith.constant 0 : i32
    return %arg0, %c0_i32 : i32, i32
  }
  func.func @transform_2(%arg0: i32) -> (i32, i32) {
    %c0_i32 = arith.constant 0 : i32
    %c0_i32_0 = arith.constant 0 : i32
    %c0_i32_1 = arith.constant 0 : i32
    return %c0_i32, %c0_i32_0 : i32, i32
  }
  func.func @transform_3(%arg0: i32) -> (i32, i32) {
    %c0_i32 = arith.constant 0 : i32
    %c0_i32_0 = arith.constant 0 : i32
    return %arg0, %c0_i32 : i32, i32
  }
}

module attributes {stable_mosaic.version = 11 : i64} {
  func.func @_aggregate_post_w_kernel(%arg0: i32, %arg1: i32, %arg2: memref<256x256xbf16, #tpu.memory_space<vmem>>, %arg3: memref<256x128xbf16, #tpu.memory_space<vmem>>, %arg4: memref<256x1xf32, #tpu.memory_space<vmem>>, %arg5: memref<256x1xf32, #tpu.memory_space<vmem>>, %arg6: memref<128x128xbf16, #tpu.memory_space<vmem>>, %arg7: memref<1x128xf32, #tpu.memory_space<vmem>>, %arg8: memref<256x128xf32, #tpu.memory_space<vmem>>, %arg9: memref<256x128xf32, #tpu.memory_space<vmem>>) attributes {dimension_semantics = [#tpu.dimension_semantics<parallel>, #tpu.dimension_semantics<arbitrary>], iteration_bounds = array<i64: 1, 1>, scalar_prefetch = 0 : i64, scratch_operands = 1 : i64, tpu.core_type = #tpu.core_type<tc>, window_params = [{transform_indices = @transform_0, window_bounds = array<i64: 256, 256>}, {transform_indices = @transform_1, window_bounds = array<i64: 256, 128>}, {transform_indices = @transform_2, window_bounds = array<i64: 256, 1>}, {transform_indices = @transform_3, window_bounds = array<i64: 256, 1>}, {pipeline_mode = #tpu.pipeline_mode<synchronous>, transform_indices = @transform_4, window_bounds = array<i64: 128, 128>}, {pipeline_mode = #tpu.pipeline_mode<synchronous>, transform_indices = @transform_5, window_bounds = array<i64: 1, 128>}, {transform_indices = @transform_6, window_bounds = array<i64: 256, 128>}]} {
    %c0_i32 = arith.constant 0 : i32
    %0 = arith.cmpi eq, %arg1, %c0_i32 : i32
    %1 = arith.extui %0 : i1 to i32
    %c0_i32_0 = arith.constant 0 : i32
    %2 = arith.cmpi ne, %1, %c0_i32_0 : i32
    scf.if %2 {
      %cst_12 = arith.constant 0.000000e+00 : f32
      %17 = vector.broadcast %cst_12 : f32 to vector<256x128xf32>
      %c0_13 = arith.constant 0 : index
      %c0_14 = arith.constant 0 : index
      %18 = vector.load %arg9[%c0_13, %c0_14] : memref<256x128xf32, #tpu.memory_space<vmem>>, vector<256x128xf32>
      tpu.vector_store %arg9[%c0_13, %c0_14], %17 {strides = array<i32>} : memref<256x128xf32, #tpu.memory_space<vmem>>, vector<256x128xf32>,
    } else {
    }
    %c0 = arith.constant 0 : index
    %c0_1 = arith.constant 0 : index
    %3 = vector.load %arg3[%c0, %c0_1] : memref<256x128xbf16, #tpu.memory_space<vmem>>, vector<256x128xbf16>
    %4 = arith.extf %3 : vector<256x128xbf16> to vector<256x128xf32>
    %c0_2 = arith.constant 0 : index
    %c0_3 = arith.constant 0 : index
    %5 = vector.load %arg4[%c0_2, %c0_3] : memref<256x1xf32, #tpu.memory_space<vmem>>, vector<256x1xf32>
    %6 = vector.broadcast %5 : vector<256x1xf32> to vector<256x128xf32>
    %7 = arith.mulf %4, %6 : vector<256x128xf32>
    %8 = arith.truncf %7 : vector<256x128xf32> to vector<256x128xbf16>
    %c0_4 = arith.constant 0 : index
    %c0_5 = arith.constant 0 : index
    %9 = vector.load %arg9[%c0_4, %c0_5] : memref<256x128xf32, #tpu.memory_space<vmem>>, vector<256x128xf32>
    %c0_6 = arith.constant 0 : index
    %c0_7 = arith.constant 0 : index
    %10 = vector.load %arg2[%c0_6, %c0_7] : memref<256x256xbf16, #tpu.memory_space<vmem>>, vector<256x256xbf16>
    %cst = arith.constant dense<0.000000e+00> : vector<256x128xf32>
    %11 = tpu.matmul %10, %8, %cst {dimension_numbers = #tpu.dot_dimension_numbers<[1], [0], [0], [1], [0, 0, 1, 1], [], []>} : vector<256x256xbf16>, vector<256x128xbf16>, vector<256x128xf32> -> vector<256x128xf32>
    %12 = arith.addf %9, %11 : vector<256x128xf32>
    %c0_8 = arith.constant 0 : index
    %c0_9 = arith.constant 0 : index
    %13 = vector.load %arg9[%c0_8, %c0_9] : memref<256x128xf32, #tpu.memory_space<vmem>>, vector<256x128xf32>
    tpu.vector_store %arg9[%c0_8, %c0_9], %12 {strides = array<i32>} : memref<256x128xf32, #tpu.memory_space<vmem>>, vector<256x128xf32>,
    %c0_i32_10 = arith.constant 0 : i32
    %14 = arith.cmpi eq, %arg1, %c0_i32_10 : i32
    %15 = arith.extui %14 : i1 to i32
    %c0_i32_11 = arith.constant 0 : i32
    %16 = arith.cmpi ne, %15, %c0_i32_11 : i32
    scf.if %16 {
      %c0_12 = arith.constant 0 : index
      %c0_13 = arith.constant 0 : index
      %17 = vector.load %arg9[%c0_12, %c0_13] : memref<256x128xf32, #tpu.memory_space<vmem>>, vector<256x128xf32>
      %c0_14 = arith.constant 0 : index
      %c0_15 = arith.constant 0 : index
      %18 = vector.load %arg5[%c0_14, %c0_15] : memref<256x1xf32, #tpu.memory_space<vmem>>, vector<256x1xf32>
      %19 = vector.broadcast %18 : vector<256x1xf32> to vector<256x128xf32>
      %20 = arith.mulf %17, %19 : vector<256x128xf32>
      %21 = arith.truncf %20 : vector<256x128xf32> to vector<256x128xbf16>
      %c0_16 = arith.constant 0 : index
      %c0_17 = arith.constant 0 : index
      %22 = vector.load %arg6[%c0_16, %c0_17] : memref<128x128xbf16, #tpu.memory_space<vmem>>, vector<128x128xbf16>
      %cst_18 = arith.constant dense<0.000000e+00> : vector<256x128xf32>
      %23 = tpu.matmul %21, %22, %cst_18 {dimension_numbers = #tpu.dot_dimension_numbers<[1], [0], [0], [1], [0, 0, 1, 1], [], []>} : vector<256x128xbf16>, vector<128x128xbf16>, vector<256x128xf32> -> vector<256x128xf32>
      %c0_19 = arith.constant 0 : index
      %c0_20 = arith.constant 0 : index
      %24 = vector.load %arg7[%c0_19, %c0_20] : memref<1x128xf32, #tpu.memory_space<vmem>>, vector<1x128xf32>
      %25 = vector.broadcast %24 : vector<1x128xf32> to vector<256x128xf32>
      %26 = arith.addf %23, %25 : vector<256x128xf32>
      %c0_21 = arith.constant 0 : index
      %c0_22 = arith.constant 0 : index
      %27 = vector.load %arg8[%c0_21, %c0_22] : memref<256x128xf32, #tpu.memory_space<vmem>>, vector<256x128xf32>
      tpu.vector_store %arg8[%c0_21, %c0_22], %26 {strides = array<i32>} : memref<256x128xf32, #tpu.memory_space<vmem>>, vector<256x128xf32>,
    } else {
    }
    return
  }
  func.func @transform_0(%arg0: i32, %arg1: i32) -> (i32, i32) {
    %c0_i32 = arith.constant 0 : i32
    return %arg0, %arg1 : i32, i32
  }
  func.func @transform_1(%arg0: i32, %arg1: i32) -> (i32, i32) {
    %c0_i32 = arith.constant 0 : i32
    %c0_i32_0 = arith.constant 0 : i32
    return %arg1, %c0_i32 : i32, i32
  }
  func.func @transform_2(%arg0: i32, %arg1: i32) -> (i32, i32) {
    %c0_i32 = arith.constant 0 : i32
    %c0_i32_0 = arith.constant 0 : i32
    return %arg1, %c0_i32 : i32, i32
  }
  func.func @transform_3(%arg0: i32, %arg1: i32) -> (i32, i32) {
    %c0_i32 = arith.constant 0 : i32
    %c0_i32_0 = arith.constant 0 : i32
    return %arg0, %c0_i32 : i32, i32
  }
  func.func @transform_4(%arg0: i32, %arg1: i32) -> (i32, i32) {
    %c0_i32 = arith.constant 0 : i32
    %c0_i32_0 = arith.constant 0 : i32
    %c0_i32_1 = arith.constant 0 : i32
    return %c0_i32, %c0_i32_0 : i32, i32
  }
  func.func @transform_5(%arg0: i32, %arg1: i32) -> (i32, i32) {
    %c0_i32 = arith.constant 0 : i32
    %c0_i32_0 = arith.constant 0 : i32
    %c0_i32_1 = arith.constant 0 : i32
    return %c0_i32, %c0_i32_0 : i32, i32
  }
  func.func @transform_6(%arg0: i32, %arg1: i32) -> (i32, i32) {
    %c0_i32 = arith.constant 0 : i32
    %c0_i32_0 = arith.constant 0 : i32
    return %arg0, %c0_i32 : i32, i32
  }
}

module attributes {stable_mosaic.version = 11 : i64} {
  func.func @_aggregate_kernel(%arg0: i32, %arg1: i32, %arg2: memref<256x256xbf16, #tpu.memory_space<vmem>>, %arg3: memref<256x128xbf16, #tpu.memory_space<vmem>>, %arg4: memref<256x1xf32, #tpu.memory_space<vmem>>, %arg5: memref<1x128xf32, #tpu.memory_space<vmem>>, %arg6: memref<256x128xbf16, #tpu.memory_space<vmem>>, %arg7: memref<256x128xf32, #tpu.memory_space<vmem>>) attributes {dimension_semantics = [#tpu.dimension_semantics<parallel>, #tpu.dimension_semantics<arbitrary>], iteration_bounds = array<i64: 1, 1>, scalar_prefetch = 0 : i64, scratch_operands = 1 : i64, tpu.core_type = #tpu.core_type<tc>, window_params = [{transform_indices = @transform_0, window_bounds = array<i64: 256, 256>}, {transform_indices = @transform_1, window_bounds = array<i64: 256, 128>}, {transform_indices = @transform_2, window_bounds = array<i64: 256, 1>}, {pipeline_mode = #tpu.pipeline_mode<synchronous>, transform_indices = @transform_3, window_bounds = array<i64: 1, 128>}, {transform_indices = @transform_4, window_bounds = array<i64: 256, 128>}]} {
    %c0_i32 = arith.constant 0 : i32
    %0 = arith.cmpi eq, %arg1, %c0_i32 : i32
    %1 = arith.extui %0 : i1 to i32
    %c0_i32_0 = arith.constant 0 : i32
    %2 = arith.cmpi ne, %1, %c0_i32_0 : i32
    scf.if %2 {
      %cst_10 = arith.constant 0.000000e+00 : f32
      %12 = vector.broadcast %cst_10 : f32 to vector<256x128xf32>
      %c0_11 = arith.constant 0 : index
      %c0_12 = arith.constant 0 : index
      %13 = vector.load %arg7[%c0_11, %c0_12] : memref<256x128xf32, #tpu.memory_space<vmem>>, vector<256x128xf32>
      tpu.vector_store %arg7[%c0_11, %c0_12], %12 {strides = array<i32>} : memref<256x128xf32, #tpu.memory_space<vmem>>, vector<256x128xf32>,
    } else {
    }
    %c0 = arith.constant 0 : index
    %c0_1 = arith.constant 0 : index
    %3 = vector.load %arg7[%c0, %c0_1] : memref<256x128xf32, #tpu.memory_space<vmem>>, vector<256x128xf32>
    %c0_2 = arith.constant 0 : index
    %c0_3 = arith.constant 0 : index
    %4 = vector.load %arg2[%c0_2, %c0_3] : memref<256x256xbf16, #tpu.memory_space<vmem>>, vector<256x256xbf16>
    %c0_4 = arith.constant 0 : index
    %c0_5 = arith.constant 0 : index
    %5 = vector.load %arg3[%c0_4, %c0_5] : memref<256x128xbf16, #tpu.memory_space<vmem>>, vector<256x128xbf16>
    %cst = arith.constant dense<0.000000e+00> : vector<256x128xf32>
    %6 = tpu.matmul %4, %5, %cst {dimension_numbers = #tpu.dot_dimension_numbers<[1], [0], [0], [1], [0, 0, 1, 1], [], []>} : vector<256x256xbf16>, vector<256x128xbf16>, vector<256x128xf32> -> vector<256x128xf32>
    %7 = arith.addf %3, %6 : vector<256x128xf32>
    %c0_6 = arith.constant 0 : index
    %c0_7 = arith.constant 0 : index
    %8 = vector.load %arg7[%c0_6, %c0_7] : memref<256x128xf32, #tpu.memory_space<vmem>>, vector<256x128xf32>
    tpu.vector_store %arg7[%c0_6, %c0_7], %7 {strides = array<i32>} : memref<256x128xf32, #tpu.memory_space<vmem>>, vector<256x128xf32>,
    %c0_i32_8 = arith.constant 0 : i32
    %9 = arith.cmpi eq, %arg1, %c0_i32_8 : i32
    %10 = arith.extui %9 : i1 to i32
    %c0_i32_9 = arith.constant 0 : i32
    %11 = arith.cmpi ne, %10, %c0_i32_9 : i32
    scf.if %11 {
      %c0_10 = arith.constant 0 : index
      %c0_11 = arith.constant 0 : index
      %12 = vector.load %arg7[%c0_10, %c0_11] : memref<256x128xf32, #tpu.memory_space<vmem>>, vector<256x128xf32>
      %c0_12 = arith.constant 0 : index
      %c0_13 = arith.constant 0 : index
      %13 = vector.load %arg4[%c0_12, %c0_13] : memref<256x1xf32, #tpu.memory_space<vmem>>, vector<256x1xf32>
      %14 = vector.broadcast %13 : vector<256x1xf32> to vector<256x128xf32>
      %15 = arith.mulf %12, %14 : vector<256x128xf32>
      %c0_14 = arith.constant 0 : index
      %c0_15 = arith.constant 0 : index
      %16 = vector.load %arg5[%c0_14, %c0_15] : memref<1x128xf32, #tpu.memory_space<vmem>>, vector<1x128xf32>
      %17 = vector.broadcast %16 : vector<1x128xf32> to vector<256x128xf32>
      %18 = arith.addf %15, %17 : vector<256x128xf32>
      %cst_16 = arith.constant 0.000000e+00 : f32
      %19 = vector.broadcast %cst_16 : f32 to vector<256x128xf32>
      %20 = arith.maximumf %18, %19 : vector<256x128xf32>
      %21 = arith.truncf %20 : vector<256x128xf32> to vector<256x128xbf16>
      %c0_17 = arith.constant 0 : index
      %c0_18 = arith.constant 0 : index
      %22 = vector.load %arg6[%c0_17, %c0_18] : memref<256x128xbf16, #tpu.memory_space<vmem>>, vector<256x128xbf16>
      tpu.vector_store %arg6[%c0_17, %c0_18], %21 {strides = array<i32>} : memref<256x128xbf16, #tpu.memory_space<vmem>>, vector<256x128xbf16>,
    } else {
    }
    return
  }
  func.func @transform_0(%arg0: i32, %arg1: i32) -> (i32, i32) {
    %c0_i32 = arith.constant 0 : i32
    return %arg0, %arg1 : i32, i32
  }
  func.func @transform_1(%arg0: i32, %arg1: i32) -> (i32, i32) {
    %c0_i32 = arith.constant 0 : i32
    %c0_i32_0 = arith.constant 0 : i32
    return %arg1, %c0_i32 : i32, i32
  }
  func.func @transform_2(%arg0: i32, %arg1: i32) -> (i32, i32) {
    %c0_i32 = arith.constant 0 : i32
    %c0_i32_0 = arith.constant 0 : i32
    return %arg0, %c0_i32 : i32, i32
  }
  func.func @transform_3(%arg0: i32, %arg1: i32) -> (i32, i32) {
    %c0_i32 = arith.constant 0 : i32
    %c0_i32_0 = arith.constant 0 : i32
    %c0_i32_1 = arith.constant 0 : i32
    return %c0_i32, %c0_i32_0 : i32, i32
  }
  func.func @transform_4(%arg0: i32, %arg1: i32) -> (i32, i32) {
    %c0_i32 = arith.constant 0 : i32
    %c0_i32_0 = arith.constant 0 : i32
    return %arg0, %c0_i32 : i32, i32
  }
}

</mosaic_0001>

<bundles_post_ra>
// kernel: _lambda_.3
= control target key start
LH: loop header
LB: loop body
LE: loop exit
PB: predicated region body
PF: predicated region fallthrough
CT: control target
= control target key end

     0   :  { %v1174_v0 = vmov 0   ;;  %s1483_s1 = inlined_call_operand.vmem [shape: f32[256,1], index: 1, kind: input, shape index: {}]   ;;  %s1484_s2 = inlined_call_operand.vmem [shape: bf16[256,128], index: 2, kind: input, shape index: {}]   ;;  %s1485_s0 = inlined_call_operand.vmem [shape: bf16[256,256], index: 0, kind: input, shape index: {}]   ;;  %s1486_s3 = inlined_call_operand.vmem [shape: bf16[256,128], index: 3, kind: output, shape index: {}]  }
   0x1   :  { %1157 = vset.pattern.permute.xlu1 %v1174_v0  ;;  %1156 = vset.pattern.permute.xlu0 %v1174_v0  ;;  %v127_v1 = vld [vmem:[%s1483_s1 + $0x80] sm:$0xff]  ;;  %v128_v3 = vld [vmem:[%s1483_s1 + $0x88] sm:$0xff]  ;;  %v114_v5 = vld [vmem:[%s1483_s1 + $0x18] sm:$0xff] }
   0x2   :  { %v111_v2 = vld [vmem:[%s1483_s1] sm:$0xff]  ;;  %225 = vperm.xlu1 %1157, %v127_v1   ;;  %v112_v4 = vld [vmem:[%s1483_s1 + $0x8] sm:$0xff]  ;;  %v113_v6 = vld [vmem:[%s1483_s1 + $0x10] sm:$0xff] }
   0x3   :  { %145 = vperm.xlu0 %1156, %v111_v2   ;;  %v130_v7 = vld [vmem:[%s1483_s1 + $0x98] sm:$0xff]  ;;  %v129_v8 = vld [vmem:[%s1483_s1 + $0x90] sm:$0xff]  ;;  %v116_v10 = vld [vmem:[%s1483_s1 + $0x28] sm:$0xff] }
   0x4   :  { %v1158_v9 = vld [vmem:[%s1484_s2 + $0x78] sm:$0xff]   ;;  %v1160_v12 = vld [vmem:[%s1484_s2 + $0x70] sm:$0xff]   ;;  %v115_v13 = vld [vmem:[%s1483_s1 + $0x20] sm:$0xff] }
   0x5   :  { %v1159_v11 = vld [vmem:[%s1484_s2 + $0x38] sm:$0xff]   ;;  %1027 = vmatprep.subr.bf16.mxu0 %v1158_v9  ;;  %1139 = vmatprep.subr.bf16.mxu1 %v1158_v9  ;;  %v1161_v14 = vld [vmem:[%s1484_s2 + $0x30] sm:$0xff]   ;;  %v1162_v15 = vld [vmem:[%s1484_s2 + $0x68] sm:$0xff]  }
   0x6   :  { %230 = vperm.xlu1 %1157, %v128_v3   ;;  %1028 = vmatpush3.bf16.msra.mxu0 %v1159_v11  ;;  %v132_v16 = vld [vmem:[%s1483_s1 + $0xa8] sm:$0xff]  ;;  %v131_v17 = vld [vmem:[%s1483_s1 + $0xa0] sm:$0xff]  ;;  %v118_v20 = vld [vmem:[%s1483_s1 + $0x38] sm:$0xff] }
   0x7   :  { %150 = vperm.xlu0 %1156, %v112_v4   ;;  %1147 = vmatpush3.bf16.msra.mxu1 %v1159_v11  ;;  %v1163_v18 = vld [vmem:[%s1484_s2 + $0x28] sm:$0xff]   ;;  %v1164_v19 = vld [vmem:[%s1484_s2 + $0x60] sm:$0xff]   ;;  %v117_v21 = vld [vmem:[%s1483_s1 + $0x30] sm:$0xff] }
   0x8   :  { %1029 = vmatprep.subr.bf16.mxu0 %v1160_v12  ;;  %1140 = vmatprep.subr.bf16.mxu1 %v1160_v12  ;;  %v1165_v22 = vld [vmem:[%s1484_s2 + $0x20] sm:$0xff]   ;;  %v1166_v23 = vld [vmem:[%s1484_s2 + $0x58] sm:$0xff]   ;;  %v133_v25 = vld [vmem:[%s1483_s1 + $0xb0] sm:$0xff] }
   0x9   :  { %v134_v24 = vld [vmem:[%s1483_s1 + $0xb8] sm:$0xff]  ;;  %v1168_v27 = vld [vmem:[%s1484_s2 + $0x50] sm:$0xff]   ;;  %v120_v28 = vld [vmem:[%s1483_s1 + $0x48] sm:$0xff] }
   0xa   :  { %160 = vperm.xlu1 %1157, %v114_v5   ;;  %1030 = vmatpush3.bf16.msra.mxu0 %v1161_v14  ;;  %v1167_v26 = vld [vmem:[%s1484_s2 + $0x18] sm:$0xff]   ;;  %v119_v29 = vld [vmem:[%s1483_s1 + $0x40] sm:$0xff]  ;;  %v1169_v30 = vld [vmem:[%s1484_s2 + $0x10] sm:$0xff]  }
   0xb   :  { %155 = vperm.xlu0 %1156, %v113_v6   ;;  %1148 = vmatpush3.bf16.msra.mxu1 %v1161_v14  ;;  %v1170_v31 = vld [vmem:[%s1484_s2 + $0x48] sm:$0xff]   ;;  %v135_v33 = vld [vmem:[%s1483_s1 + $0xc0] sm:$0xff]  ;;  %v122_v36 = vld [vmem:[%s1483_s1 + $0x58] sm:$0xff] }
   0xc   :  { %1031 = vmatprep.subr.bf16.mxu0 %v1162_v15  ;;  %1141 = vmatprep.subr.bf16.mxu1 %v1162_v15  ;;  %v136_v32 = vld [vmem:[%s1483_s1 + $0xc8] sm:$0xff]  ;;  %v1172_v35 = vld [vmem:[%s1484_s2 + $0x40] sm:$0xff]   ;;  %v121_v37 = vld [vmem:[%s1483_s1 + $0x50] sm:$0xff] }
   0xd   :  { %v1171_v34 = vld [vmem:[%s1484_s2 + $0x8] sm:$0xff]   ;;  %v1173_v38 = vld [vmem:[%s1484_s2] sm:$0xff]   ;;  %v138_v39 = vld [vmem:[%s1483_s1 + $0xd8] sm:$0xff] }
   0xe   :  { %240 = vperm.xlu1 %1157, %v130_v7   ;;  %1032 = vmatpush3.bf16.msra.mxu0 %v1163_v18  ;;  %v137_v40 = vld [vmem:[%s1483_s1 + $0xd0] sm:$0xff]  ;;  %v124_v41 = vld [vmem:[%s1483_s1 + $0x68] sm:$0xff]  ;;  %v123_v42 = vld [vmem:[%s1483_s1 + $0x60] sm:$0xff] }
   0xf   :  { %235 = vperm.xlu0 %1156, %v129_v8   ;;  %1149 = vmatpush3.bf16.msra.mxu1 %v1163_v18  ;;  %v140_v43 = vld [vmem:[%s1483_s1 + $0xe8] sm:$0xff]  ;;  %v139_v44 = vld [vmem:[%s1483_s1 + $0xe0] sm:$0xff]  ;;  %v126_v45 = vld [vmem:[%s1483_s1 + $0x78] sm:$0xff] }
  0x10   :  { %1033 = vmatprep.subr.bf16.mxu0 %v1164_v19  ;;  %1142 = vmatprep.subr.bf16.mxu1 %v1164_v19  ;;  %v125_v46 = vld [vmem:[%s1483_s1 + $0x70] sm:$0xff]  ;;  %v142_v47 = vld [vmem:[%s1483_s1 + $0xf8] sm:$0xff]  ;;  %v31_v49 = vld [vmem:[%s1485_s0 + $0x80] sm:$0xff] }
  0x11   :  { %v141_v48 = vld [vmem:[%s1483_s1 + $0xf0] sm:$0xff]  ;;  %v15_v50 = vld [vmem:[%s1485_s0] sm:$0xff]  ;;  %v32_v51 = vld [vmem:[%s1485_s0 + $0x88] sm:$0xff]  ;;  %v79_v54 = vunpack.c.l.bf16 %v31_v49  ;;  %v80_v55 = vunpack.c.h.bf16 %v31_v49 }
  0x12   :  { %170 = vperm.xlu1 %1157, %v116_v10   ;;  %1034 = vmatpush3.bf16.msra.mxu0 %v1165_v22  ;;  %v16_v52 = vld [vmem:[%s1485_s0 + $0x8] sm:$0xff]  ;;  %v47_v57 = vunpack.c.l.bf16 %v15_v50  ;;  %v48_v58 = vunpack.c.h.bf16 %v15_v50  ;;  %v18_v59 = vld [vmem:[%s1485_s0 + $0x18] sm:$0xff]  ;;  %v17_v60 = vld [vmem:[%s1485_s0 + $0x10] sm:$0xff]  ;;  %v81_v61 = vunpack.c.l.bf16 %v32_v51  ;;  %v82_v62 = vunpack.c.h.bf16 %v32_v51 }
  0x13   :  { %165 = vperm.xlu0 %1156, %v115_v13   ;;  %1150 = vmatpush3.bf16.msra.mxu1 %v1165_v22  ;;  %v49_v63 = vunpack.c.l.bf16 %v16_v52  ;;  %v50_v0 = vunpack.c.h.bf16 %v16_v52  ;;  %v54_v1 = vunpack.c.h.bf16 %v18_v59  ;;  %v52_v2 = vunpack.c.h.bf16 %v17_v60  ;;  %v34_v13 = vld [vmem:[%s1485_s0 + $0x98] sm:$0xff]  ;;  %v33_v14 = vld [vmem:[%s1485_s0 + $0x90] sm:$0xff] }
  0x14   :  { %1035 = vmatprep.subr.bf16.mxu0 %v1166_v23  ;;  %1143 = vmatprep.subr.bf16.mxu1 %v1166_v23  ;;  %v51_v22 = vunpack.c.l.bf16 %v17_v60  ;;  %v85_v23 = vunpack.c.l.bf16 %v34_v13 }
  0x16   :  { %250 = vperm.xlu1 %1157, %v132_v16   ;;  %1036 = vmatpush3.bf16.msra.mxu0 %v1167_v26 }
  0x17   :  { %245 = vperm.xlu0 %1156, %v131_v17   ;;  %1151 = vmatpush3.bf16.msra.mxu1 %v1167_v26 }
  0x18   :  { %1037 = vmatprep.subr.bf16.mxu0 %v1168_v27  ;;  %1144 = vmatprep.subr.bf16.mxu1 %v1168_v27  ;;  %v83_v27 = vunpack.c.l.bf16 %v33_v14 }
  0x1a   :  { %180 = vperm.xlu1 %1157, %v118_v20   ;;  %1038 = vmatpush3.bf16.msra.mxu0 %v1169_v30  ;;  %v53_v20 = vunpack.c.l.bf16 %v18_v59 }
  0x1b   :  { %175 = vperm.xlu0 %1156, %v117_v21   ;;  %1152 = vmatpush3.bf16.msra.mxu1 %v1169_v30  ;;  %v19_v30 = vld [vmem:[%s1485_s0 + $0x20] sm:$0xff] }
  0x1c   :  { %1039 = vmatprep.subr.bf16.mxu0 %v1170_v31  ;;  %1145 = vmatprep.subr.bf16.mxu1 %v1170_v31  ;;  %v55_v50 = vunpack.c.l.bf16 %v19_v30 }
  0x1e   :  { %260 = vperm.xlu1 %1157, %v134_v24   ;;  %1040 = vmatpush3.bf16.msra.mxu0 %v1171_v34  ;;  %v86_v24 = vunpack.c.h.bf16 %v34_v13 }
  0x1f   :  { %255 = vperm.xlu0 %1156, %v133_v25   ;;  %1153 = vmatpush3.bf16.msra.mxu1 %v1171_v34 }
  0x20   :  { %1041 = vmatprep.subr.bf16.mxu0 %v1172_v35  ;;  %1146 = vmatprep.subr.bf16.mxu1 %v1172_v35 }
  0x22   :  { %190 = vperm.xlu1 %1157, %v120_v28   ;;  %1042 = vmatpush3.bf16.msra.mxu0 %v1173_v38  ;;  %v84_v28 = vunpack.c.h.bf16 %v33_v14 }
  0x23   :  { %185 = vperm.xlu0 %1156, %v119_v29   ;;  %1154 = vmatpush3.bf16.msra.mxu1 %v1173_v38  ;;  %v20_v29 = vld [vmem:[%s1485_s0 + $0x28] sm:$0xff] }
  0x26   :  { %270 = vperm.xlu1 %1157, %v136_v32  }
  0x27   :  { %265 = vperm.xlu0 %1156, %v135_v33  }
  0x2a   :  { %200 = vperm.xlu1 %1157, %v122_v36   ;;  %v58_v36 = vunpack.c.h.bf16 %v20_v29 }
  0x2b   :  { %195 = vperm.xlu0 %1156, %v121_v37   ;;  %v56_v37 = vunpack.c.h.bf16 %v19_v30 }
  0x2e   :  { %280 = vperm.xlu1 %1157, %v138_v39  }
  0x2f   :  { %275 = vperm.xlu0 %1156, %v137_v40  }
  0x32   :  { %210 = vperm.xlu1 %1157, %v124_v41  }
  0x33   :  { %205 = vperm.xlu0 %1156, %v123_v42   ;;  %v36_v42 = vld [vmem:[%s1485_s0 + $0xa8] sm:$0xff] }
  0x34   :  { %v89_v51 = vunpack.c.l.bf16 %v36_v42  ;;  %v90_v52 = vunpack.c.h.bf16 %v36_v42 }
  0x36   :  { %290 = vperm.xlu1 %1157, %v140_v43   ;;  %v35_v43 = vld [vmem:[%s1485_s0 + $0xa0] sm:$0xff] }
  0x37   :  { %285 = vperm.xlu0 %1156, %v139_v44  }
  0x3a   :  { %220 = vperm.xlu1 %1157, %v126_v45  }
  0x3b   :  { %215 = vperm.xlu0 %1156, %v125_v46   ;;  %v57_v46 = vunpack.c.l.bf16 %v20_v29 }
  0x3e   :  { %300 = vperm.xlu1 %1157, %v142_v47  }
  0x3f   :  { %295 = vperm.xlu0 %1156, %v141_v48  }
  0x7d   :  { %v226_v53 = vpop.permute.xlu1 %225 }
  0x7e   :  { %v146_v56 = vpop.permute.xlu0 %145  ;;  %v335_v3 = vmul.f32 %v226_v53, %v79_v54  ;;  %v336_v4 = vmul.f32 %v226_v53, %v80_v55  ;;  %v87_v55 = vunpack.c.l.bf16 %v35_v43 }
  0x7f   :  { %v303_v5 = vmul.f32 %v146_v56, %v47_v57  ;;  %v304_v6 = vmul.f32 %v146_v56, %v48_v58  ;;  %v88_v56 = vunpack.c.h.bf16 %v35_v43  ;;  %v22_v57 = vld [vmem:[%s1485_s0 + $0x38] sm:$0xff]  ;;  %v21_v58 = vld [vmem:[%s1485_s0 + $0x30] sm:$0xff] }
  0x80   :  { %v59_v14 = vunpack.c.l.bf16 %v21_v58 }
  0x81   :  { %v231_v7 = vpop.permute.xlu1 %230 }
  0x82   :  { %v151_v8 = vpop.permute.xlu0 %150  ;;  %v337_v9 = vmul.f32 %v231_v7, %v81_v61  ;;  %v338_v10 = vmul.f32 %v231_v7, %v82_v62  ;;  %v37_v7 = vld [vmem:[%s1485_s0 + $0xb0] sm:$0xff] }
  0x83   :  { %v305_v11 = vmul.f32 %v151_v8, %v49_v63  ;;  %v306_v12 = vmul.f32 %v151_v8, %v50_v0  ;;  %v62_v0 = vunpack.c.h.bf16 %v22_v57 }
  0x84   :  { %v383_v15 = vpack.c.bf16 %v337_v9, %v335_v3  ;;  %v384_v18 = vpack.c.bf16 %v338_v10, %v336_v4  ;;  %v61_v10 = vunpack.c.l.bf16 %v22_v57 }
  0x85   :  { %v367_v16 = vpack.c.bf16 %v305_v11, %v303_v5  ;;  %v368_v17 = vpack.c.bf16 %v306_v12, %v304_v6  ;;  %v161_v19 = vpop.permute.xlu1 %160  ;;  %v38_v6 = vld [vmem:[%s1485_s0 + $0xb8] sm:$0xff] }
  0x86   :  { %v156_v21 = vpop.permute.xlu0 %155  ;;  %v310_v25 = vmul.f32 %v161_v19, %v54_v1  ;;  %623 = vmatprep.mubr.bf16.mxu1 %v384_v18  ;;  %v309_v32 = vmul.f32 %v161_v19, %v53_v20  ;;  %v60_v1 = vunpack.c.h.bf16 %v21_v58  ;;  %v91_v19 = vunpack.c.l.bf16 %v37_v7 }
  0x87   :  { %v308_v26 = vmul.f32 %v156_v21, %v52_v2  ;;  %559 = vmatprep.mubr.bf16.mxu0 %v368_v17  ;;  %624 = vmatmul.mubr.bf16.vlgmr.msra.gmra.mxu1 %v383_v15  ;;  %v307_v33 = vmul.f32 %v156_v21, %v51_v22  ;;  %v93_v15 = vunpack.c.l.bf16 %v38_v6  ;;  %v92_v20 = vunpack.c.h.bf16 %v37_v7  ;;  %v24_v21 = vld [vmem:[%s1485_s0 + $0x48] sm:$0xff]  ;;  %v23_v22 = vld [vmem:[%s1485_s0 + $0x40] sm:$0xff] }
  0x88   :  { %560 = vmatmul.mubr.bf16.vlgmr.msra.gmra.mxu0 %v367_v16  ;;  %v94_v16 = vunpack.c.h.bf16 %v38_v6  ;;  %v64_v29 = vunpack.c.h.bf16 %v23_v22  ;;  %v63_v42 = vunpack.c.l.bf16 %v23_v22 }
  0x89   :  { %v370_v31 = vpack.c.bf16 %v310_v25, %v308_v26  ;;  %v241_v34 = vpop.permute.xlu1 %240  ;;  %v369_v47 = vpack.c.bf16 %v309_v32, %v307_v33 }
  0x8a   :  { %v236_v35 = vpop.permute.xlu0 %235  ;;  %v341_v38 = vmul.f32 %v241_v34, %v85_v23  ;;  %v342_v39 = vmul.f32 %v241_v34, %v86_v24  ;;  %v40_v34 = vld [vmem:[%s1485_s0 + $0xc8] sm:$0xff] }
  0x8b   :  { %v339_v40 = vmul.f32 %v236_v35, %v83_v27  ;;  %v340_v41 = vmul.f32 %v236_v35, %v84_v28  ;;  %567 = vmatprep.mubr.bf16.mxu0 %v370_v31  ;;  %v66_v28 = vunpack.c.h.bf16 %v24_v21  ;;  %v39_v35 = vld [vmem:[%s1485_s0 + $0xc0] sm:$0xff]  ;;  %v97_v43 = vunpack.c.l.bf16 %v40_v34 }
  0x8d   :  { %v385_v44 = vpack.c.bf16 %v341_v38, %v339_v40  ;;  %v386_v45 = vpack.c.bf16 %v342_v39, %v340_v41  ;;  %v171_v48 = vpop.permute.xlu1 %170  ;;  %v65_v38 = vunpack.c.l.bf16 %v24_v21 }
  0x8e   :  { %v166_v49 = vpop.permute.xlu0 %165  ;;  %v314_v53 = vmul.f32 %v171_v48, %v58_v36  ;;  %v313_v60 = vmul.f32 %v171_v48, %v57_v46  ;;  %v96_v48 = vunpack.c.h.bf16 %v39_v35 }
  0x8f   :  { %v312_v54 = vmul.f32 %v166_v49, %v56_v37  ;;  %631 = vmatprep.mubr.bf16.mxu1 %v386_v45  ;;  %v311_v61 = vmul.f32 %v166_v49, %v55_v50  ;;  %v26_v49 = vld [vmem:[%s1485_s0 + $0x58] sm:$0xff]  ;;  %v25_v50 = vld [vmem:[%s1485_s0 + $0x50] sm:$0xff] }
  0x90   :  { %568 = vmatmul.mubr.bf16.gmra.mxu0 %v369_v47  ;;  %632 = vmatmul.mubr.bf16.gmra.mxu1 %v385_v44  ;;  %v98_v44 = vunpack.c.h.bf16 %v40_v34  ;;  %v95_v47 = vunpack.c.l.bf16 %v39_v35  ;;  %v68_v57 = vunpack.c.h.bf16 %v25_v50  ;;  %v67_v6 = vunpack.c.l.bf16 %v25_v50 }
  0x91   :  { %v372_v59 = vpack.c.bf16 %v314_v53, %v312_v54  ;;  %v251_v62 = vpop.permute.xlu1 %250  ;;  %v371_v11 = vpack.c.bf16 %v313_v60, %v311_v61 }
  0x92   :  { %v246_v63 = vpop.permute.xlu0 %245  ;;  %v345_v2 = vmul.f32 %v251_v62, %v89_v51  ;;  %v346_v3 = vmul.f32 %v251_v62, %v90_v52  ;;  %v42_v62 = vld [vmem:[%s1485_s0 + $0xd8] sm:$0xff] }
  0x93   :  { %v343_v4 = vmul.f32 %v246_v63, %v87_v55  ;;  %v344_v5 = vmul.f32 %v246_v63, %v88_v56  ;;  %575 = vmatprep.mubr.bf16.mxu0 %v372_v59  ;;  %v70_v56 = vunpack.c.h.bf16 %v26_v49  ;;  %v41_v63 = vld [vmem:[%s1485_s0 + $0xd0] sm:$0xff]  ;;  %v101_v7 = vunpack.c.l.bf16 %v42_v62 }
  0x95   :  { %v387_v8 = vpack.c.bf16 %v345_v2, %v343_v4  ;;  %v388_v9 = vpack.c.bf16 %v346_v3, %v344_v5  ;;  %v181_v12 = vpop.permute.xlu1 %180  ;;  %v69_v2 = vunpack.c.l.bf16 %v26_v49 }
  0x96   :  { %v176_v13 = vpop.permute.xlu0 %175  ;;  %v318_v17 = vmul.f32 %v181_v12, %v62_v0  ;;  %v317_v24 = vmul.f32 %v181_v12, %v61_v10  ;;  %v100_v12 = vunpack.c.h.bf16 %v41_v63 }
  0x97   :  { %v316_v18 = vmul.f32 %v176_v13, %v60_v1  ;;  %639 = vmatprep.mubr.bf16.mxu1 %v388_v9  ;;  %v315_v25 = vmul.f32 %v176_v13, %v59_v14  ;;  %v28_v13 = vld [vmem:[%s1485_s0 + $0x68] sm:$0xff]  ;;  %v27_v14 = vld [vmem:[%s1485_s0 + $0x60] sm:$0xff] }
  0x98   :  { %576 = vmatmul.mubr.bf16.gmra.mxu0 %v371_v11  ;;  %640 = vmatmul.mubr.bf16.gmra.mxu1 %v387_v8  ;;  %v102_v8 = vunpack.c.h.bf16 %v42_v62  ;;  %v99_v11 = vunpack.c.l.bf16 %v41_v63  ;;  %v72_v21 = vunpack.c.h.bf16 %v27_v14  ;;  %v71_v34 = vunpack.c.l.bf16 %v27_v14 }
  0x99   :  { %v374_v23 = vpack.c.bf16 %v318_v17, %v316_v18  ;;  %v261_v26 = vpop.permute.xlu1 %260  ;;  %v373_v39 = vpack.c.bf16 %v317_v24, %v315_v25 }
  0x9a   :  { %v256_v27 = vpop.permute.xlu0 %255  ;;  %v349_v30 = vmul.f32 %v261_v26, %v93_v15  ;;  %v350_v31 = vmul.f32 %v261_v26, %v94_v16  ;;  %v44_v26 = vld [vmem:[%s1485_s0 + $0xe8] sm:$0xff] }
  0x9b   :  { %v347_v32 = vmul.f32 %v256_v27, %v91_v19  ;;  %v348_v33 = vmul.f32 %v256_v27, %v92_v20  ;;  %583 = vmatprep.mubr.bf16.mxu0 %v374_v23  ;;  %v74_v20 = vunpack.c.h.bf16 %v28_v13  ;;  %v43_v27 = vld [vmem:[%s1485_s0 + $0xe0] sm:$0xff]  ;;  %v105_v35 = vunpack.c.l.bf16 %v44_v26 }
  0x9d   :  { %v389_v36 = vpack.c.bf16 %v349_v30, %v347_v32  ;;  %v390_v37 = vpack.c.bf16 %v350_v31, %v348_v33  ;;  %v191_v40 = vpop.permute.xlu1 %190  ;;  %v73_v30 = vunpack.c.l.bf16 %v28_v13 }
  0x9e   :  { %v186_v41 = vpop.permute.xlu0 %185  ;;  %v322_v45 = vmul.f32 %v191_v40, %v66_v28  ;;  %v321_v52 = vmul.f32 %v191_v40, %v65_v38  ;;  %v104_v40 = vunpack.c.h.bf16 %v43_v27 }
  0x9f   :  { %v320_v46 = vmul.f32 %v186_v41, %v64_v29  ;;  %647 = vmatprep.mubr.bf16.mxu1 %v390_v37  ;;  %v319_v53 = vmul.f32 %v186_v41, %v63_v42  ;;  %v30_v41 = vld [vmem:[%s1485_s0 + $0x78] sm:$0xff]  ;;  %v29_v42 = vld [vmem:[%s1485_s0 + $0x70] sm:$0xff] }
  0xa0   :  { %584 = vmatmul.mubr.bf16.gmra.mxu0 %v373_v39  ;;  %648 = vmatmul.mubr.bf16.gmra.mxu1 %v389_v36  ;;  %v106_v36 = vunpack.c.h.bf16 %v44_v26  ;;  %v103_v39 = vunpack.c.l.bf16 %v43_v27  ;;  %v76_v49 = vunpack.c.h.bf16 %v29_v42  ;;  %v75_v62 = vunpack.c.l.bf16 %v29_v42 }
  0xa1   :  { %v376_v51 = vpack.c.bf16 %v322_v45, %v320_v46  ;;  %v271_v54 = vpop.permute.xlu1 %270  ;;  %v375_v3 = vpack.c.bf16 %v321_v52, %v319_v53 }
  0xa2   :  { %v266_v55 = vpop.permute.xlu0 %265  ;;  %v353_v58 = vmul.f32 %v271_v54, %v97_v43  ;;  %v354_v59 = vmul.f32 %v271_v54, %v98_v44  ;;  %v46_v54 = vld [vmem:[%s1485_s0 + $0xf8] sm:$0xff] }
  0xa3   :  { %v351_v60 = vmul.f32 %v266_v55, %v95_v47  ;;  %v352_v61 = vmul.f32 %v266_v55, %v96_v48  ;;  %591 = vmatprep.mubr.bf16.mxu0 %v376_v51  ;;  %v78_v48 = vunpack.c.h.bf16 %v30_v41  ;;  %v45_v55 = vld [vmem:[%s1485_s0 + $0xf0] sm:$0xff]  ;;  %v109_v63 = vunpack.c.l.bf16 %v46_v54 }
  0xa5   :  { %v391_v0 = vpack.c.bf16 %v353_v58, %v351_v60  ;;  %v392_v1 = vpack.c.bf16 %v354_v59, %v352_v61  ;;  %v201_v4 = vpop.permute.xlu1 %200  ;;  %v77_v58 = vunpack.c.l.bf16 %v30_v41 }
  0xa6   :  { %v196_v5 = vpop.permute.xlu0 %195  ;;  %v326_v9 = vmul.f32 %v201_v4, %v70_v56  ;;  %v325_v16 = vmul.f32 %v201_v4, %v69_v2  ;;  %v108_v4 = vunpack.c.h.bf16 %v45_v55 }
  0xa7   :  { %v324_v10 = vmul.f32 %v196_v5, %v68_v57  ;;  %655 = vmatprep.mubr.bf16.mxu1 %v392_v1  ;;  %v323_v17 = vmul.f32 %v196_v5, %v67_v6 }
  0xa8   :  { %592 = vmatmul.mubr.bf16.gmra.mxu0 %v375_v3  ;;  %656 = vmatmul.mubr.bf16.gmra.mxu1 %v391_v0  ;;  %v110_v0 = vunpack.c.h.bf16 %v46_v54  ;;  %v107_v3 = vunpack.c.l.bf16 %v45_v55 }
  0xa9   :  { %v378_v15 = vpack.c.bf16 %v326_v9, %v324_v10  ;;  %v281_v18 = vpop.permute.xlu1 %280  ;;  %v377_v31 = vpack.c.bf16 %v325_v16, %v323_v17 }
  0xaa   :  { %v276_v19 = vpop.permute.xlu0 %275  ;;  %v357_v22 = vmul.f32 %v281_v18, %v101_v7  ;;  %v358_v23 = vmul.f32 %v281_v18, %v102_v8 }
  0xab   :  { %v355_v24 = vmul.f32 %v276_v19, %v99_v11  ;;  %v356_v25 = vmul.f32 %v276_v19, %v100_v12  ;;  %599 = vmatprep.mubr.bf16.mxu0 %v378_v15 }
  0xad   :  { %v393_v28 = vpack.c.bf16 %v357_v22, %v355_v24  ;;  %v394_v29 = vpack.c.bf16 %v358_v23, %v356_v25  ;;  %v211_v32 = vpop.permute.xlu1 %210 }
  0xae   :  { %v206_v33 = vpop.permute.xlu0 %205  ;;  %v330_v37 = vmul.f32 %v211_v32, %v74_v20  ;;  %v329_v44 = vmul.f32 %v211_v32, %v73_v30 }
  0xaf   :  { %v328_v38 = vmul.f32 %v206_v33, %v72_v21  ;;  %663 = vmatprep.mubr.bf16.mxu1 %v394_v29  ;;  %v327_v45 = vmul.f32 %v206_v33, %v71_v34 }
  0xb0   :  { %600 = vmatmul.mubr.bf16.gmra.mxu0 %v377_v31  ;;  %664 = vmatmul.mubr.bf16.gmra.mxu1 %v393_v28 }
  0xb1   :  { %v380_v43 = vpack.c.bf16 %v330_v37, %v328_v38  ;;  %v291_v46 = vpop.permute.xlu1 %290  ;;  %v379_v59 = vpack.c.bf16 %v329_v44, %v327_v45 }
  0xb2   :  { %v286_v47 = vpop.permute.xlu0 %285  ;;  %v361_v50 = vmul.f32 %v291_v46, %v105_v35  ;;  %v362_v51 = vmul.f32 %v291_v46, %v106_v36 }
  0xb3   :  { %v359_v52 = vmul.f32 %v286_v47, %v103_v39  ;;  %v360_v53 = vmul.f32 %v286_v47, %v104_v40  ;;  %607 = vmatprep.mubr.bf16.mxu0 %v380_v43 }
  0xb5   :  { %v395_v56 = vpack.c.bf16 %v361_v50, %v359_v52  ;;  %v396_v57 = vpack.c.bf16 %v362_v51, %v360_v53  ;;  %v221_v60 = vpop.permute.xlu1 %220 }
  0xb6   :  { %v216_v61 = vpop.permute.xlu0 %215  ;;  %v334_v1 = vmul.f32 %v221_v60, %v78_v48  ;;  %v333_v6 = vmul.f32 %v221_v60, %v77_v58 }
  0xb7   :  { %v332_v2 = vmul.f32 %v216_v61, %v76_v49  ;;  %671 = vmatprep.mubr.bf16.mxu1 %v396_v57  ;;  %v331_v7 = vmul.f32 %v216_v61, %v75_v62 }
  0xb8   :  { %608 = vmatmul.mubr.bf16.gmra.mxu0 %v379_v59  ;;  %672 = vmatmul.mubr.bf16.gmra.mxu1 %v395_v56 }
  0xb9   :  { %v382_v5 = vpack.c.bf16 %v334_v1, %v332_v2  ;;  %v301_v8 = vpop.permute.xlu1 %300  ;;  %v381_v16 = vpack.c.bf16 %v333_v6, %v331_v7 }
  0xba   :  { %v296_v9 = vpop.permute.xlu0 %295  ;;  %v365_v10 = vmul.f32 %v301_v8, %v109_v63  ;;  %v366_v11 = vmul.f32 %v301_v8, %v110_v0 }
  0xbb   :  { %v363_v12 = vmul.f32 %v296_v9, %v107_v3  ;;  %v364_v13 = vmul.f32 %v296_v9, %v108_v4  ;;  %615 = vmatprep.mubr.bf16.mxu0 %v382_v5 }
  0xbd   :  { %v397_v14 = vpack.c.bf16 %v365_v10, %v363_v12  ;;  %v398_v15 = vpack.c.bf16 %v366_v11, %v364_v13 }
  0xbf   :  { %679 = vmatprep.mubr.bf16.mxu1 %v398_v15 }
  0xc0   :  { %616 = vmatmul.mubr.bf16.gmra.mxu0 %v381_v16  ;;  %680 = vmatmul.mubr.bf16.gmra.mxu1 %v397_v14 }
 0x147   :  { %v1091_v18 = vpop.f32.mrf.mxu1 }
 0x148   :  { %v1043_v17 = vpop.f32.mrf.mxu0 }
 0x149   :  { %v1092_v20 = vpop.f32.mrf.mxu1 }
 0x14a   :  { %v1044_v19 = vpop.f32.mrf.mxu0  ;;  %v1093_v27 = vadd.f32 %v1092_v20, %v1091_v18 }
 0x14b   :  { %v1094_v22 = vpop.f32.mrf.mxu1  ;;  %v1045_v24 = vadd.f32 %v1044_v19, %v1043_v17 }
 0x14c   :  { %v1046_v21 = vpop.f32.mrf.mxu0 }
 0x14d   :  { %v1095_v26 = vpop.f32.mrf.mxu1 }
 0x14e   :  { %v1047_v23 = vpop.f32.mrf.mxu0  ;;  %v1096_v28 = vadd.f32 %v1095_v26, %v1094_v22 }
 0x14f   :  { %v1048_v25 = vadd.f32 %v1047_v23, %v1046_v21 }
 0x150   :  { %v1049_v29 = vpop.f32.mrf.mxu0  ;;  %v1097_v31 = vpop.f32.mrf.mxu1  ;;  %v975_v32 = vpack.c.bf16 %v1096_v28, %v1093_v27 }
 0x151   :  { %v935_v30 = vpack.c.bf16 %v1048_v25, %v1045_v24 }
 0x152   :  { %v1050_v33 = vpop.f32.mrf.mxu0  ;;  %v1098_v34 = vpop.f32.mrf.mxu1  ;;  %1019 = vst [vmem:[%s1486_s3 + $0x40] sm:$0xff] %v975_v32  }
 0x153   :  { %936 = vst [vmem:[%s1486_s3] sm:$0xff] %v935_v30   ;;  %v1051_v38 = vadd.f32 %v1050_v33, %v1049_v29  ;;  %v1099_v41 = vadd.f32 %v1098_v34, %v1097_v31 }
 0x154   :  { %v1052_v35 = vpop.f32.mrf.mxu0  ;;  %v1100_v36 = vpop.f32.mrf.mxu1 }
 0x156   :  { %v1053_v37 = vpop.f32.mrf.mxu0  ;;  %v1101_v40 = vpop.f32.mrf.mxu1 }
 0x157   :  { %v1054_v39 = vadd.f32 %v1053_v37, %v1052_v35  ;;  %v1102_v42 = vadd.f32 %v1101_v40, %v1100_v36 }
 0x158   :  { %v1055_v43 = vpop.f32.mrf.mxu0  ;;  %v1103_v45 = vpop.f32.mrf.mxu1 }
 0x159   :  { %v940_v44 = vpack.c.bf16 %v1054_v39, %v1051_v38  ;;  %v980_v46 = vpack.c.bf16 %v1102_v42, %v1099_v41 }
 0x15a   :  { %v1056_v47 = vpop.f32.mrf.mxu0  ;;  %v1104_v48 = vpop.f32.mrf.mxu1 }
 0x15b   :  { %1012 = vst [vmem:[%s1486_s3 + $0x8] sm:$0xff] %v940_v44   ;;  %1020 = vst [vmem:[%s1486_s3 + $0x48] sm:$0xff] %v980_v46   ;;  %v1057_v52 = vadd.f32 %v1056_v47, %v1055_v43  ;;  %v1105_v55 = vadd.f32 %v1104_v48, %v1103_v45 }
 0x15c   :  { %v1058_v49 = vpop.f32.mrf.mxu0  ;;  %v1106_v50 = vpop.f32.mrf.mxu1 }
 0x15e   :  { %v1059_v51 = vpop.f32.mrf.mxu0  ;;  %v1107_v54 = vpop.f32.mrf.mxu1 }
 0x15f   :  { %v1060_v53 = vadd.f32 %v1059_v51, %v1058_v49  ;;  %v1108_v56 = vadd.f32 %v1107_v54, %v1106_v50 }
 0x160   :  { %v1061_v57 = vpop.f32.mrf.mxu0  ;;  %v1109_v59 = vpop.f32.mrf.mxu1 }
 0x161   :  { %v945_v58 = vpack.c.bf16 %v1060_v53, %v1057_v52  ;;  %v985_v60 = vpack.c.bf16 %v1108_v56, %v1105_v55 }
 0x162   :  { %v1062_v61 = vpop.f32.mrf.mxu0  ;;  %v1110_v62 = vpop.f32.mrf.mxu1 }
 0x163   :  { %1013 = vst [vmem:[%s1486_s3 + $0x10] sm:$0xff] %v945_v58   ;;  %1021 = vst [vmem:[%s1486_s3 + $0x50] sm:$0xff] %v985_v60   ;;  %v1063_v2 = vadd.f32 %v1062_v61, %v1061_v57  ;;  %v1111_v5 = vadd.f32 %v1110_v62, %v1109_v59 }
 0x164   :  { %v1064_v63 = vpop.f32.mrf.mxu0  ;;  %v1112_v0 = vpop.f32.mrf.mxu1 }
 0x166   :  { %v1065_v1 = vpop.f32.mrf.mxu0  ;;  %v1113_v4 = vpop.f32.mrf.mxu1 }
 0x167   :  { %v1066_v3 = vadd.f32 %v1065_v1, %v1064_v63  ;;  %v1114_v6 = vadd.f32 %v1113_v4, %v1112_v0 }
 0x168   :  { %v1067_v7 = vpop.f32.mrf.mxu0  ;;  %v1115_v9 = vpop.f32.mrf.mxu1 }
 0x169   :  { %v950_v8 = vpack.c.bf16 %v1066_v3, %v1063_v2  ;;  %v990_v10 = vpack.c.bf16 %v1114_v6, %v1111_v5 }
 0x16a   :  { %v1068_v11 = vpop.f32.mrf.mxu0  ;;  %v1116_v12 = vpop.f32.mrf.mxu1 }
 0x16b   :  { %1014 = vst [vmem:[%s1486_s3 + $0x18] sm:$0xff] %v950_v8   ;;  %1022 = vst [vmem:[%s1486_s3 + $0x58] sm:$0xff] %v990_v10   ;;  %v1069_v16 = vadd.f32 %v1068_v11, %v1067_v7  ;;  %v1117_v19 = vadd.f32 %v1116_v12, %v1115_v9 }
 0x16c   :  { %v1070_v13 = vpop.f32.mrf.mxu0  ;;  %v1118_v14 = vpop.f32.mrf.mxu1 }
 0x16e   :  { %v1071_v15 = vpop.f32.mrf.mxu0  ;;  %v1119_v18 = vpop.f32.mrf.mxu1 }
 0x16f   :  { %v1072_v17 = vadd.f32 %v1071_v15, %v1070_v13  ;;  %v1120_v20 = vadd.f32 %v1119_v18, %v1118_v14 }
 0x170   :  { %v1073_v21 = vpop.f32.mrf.mxu0  ;;  %v1121_v23 = vpop.f32.mrf.mxu1 }
 0x171   :  { %v955_v22 = vpack.c.bf16 %v1072_v17, %v1069_v16  ;;  %v995_v24 = vpack.c.bf16 %v1120_v20, %v1117_v19 }
 0x172   :  { %v1074_v25 = vpop.f32.mrf.mxu0  ;;  %v1122_v26 = vpop.f32.mrf.mxu1 }
 0x173   :  { %1015 = vst [vmem:[%s1486_s3 + $0x20] sm:$0xff] %v955_v22   ;;  %1023 = vst [vmem:[%s1486_s3 + $0x60] sm:$0xff] %v995_v24   ;;  %v1075_v30 = vadd.f32 %v1074_v25, %v1073_v21  ;;  %v1123_v33 = vadd.f32 %v1122_v26, %v1121_v23 }
 0x174   :  { %v1076_v27 = vpop.f32.mrf.mxu0  ;;  %v1124_v28 = vpop.f32.mrf.mxu1 }
 0x176   :  { %v1077_v29 = vpop.f32.mrf.mxu0  ;;  %v1125_v32 = vpop.f32.mrf.mxu1 }
 0x177   :  { %v1078_v31 = vadd.f32 %v1077_v29, %v1076_v27  ;;  %v1126_v34 = vadd.f32 %v1125_v32, %v1124_v28 }
 0x178   :  { %v1079_v35 = vpop.f32.mrf.mxu0  ;;  %v1127_v37 = vpop.f32.mrf.mxu1 }
 0x179   :  { %v960_v36 = vpack.c.bf16 %v1078_v31, %v1075_v30  ;;  %v1000_v38 = vpack.c.bf16 %v1126_v34, %v1123_v33 }
 0x17a   :  { %v1080_v39 = vpop.f32.mrf.mxu0  ;;  %v1128_v40 = vpop.f32.mrf.mxu1 }
 0x17b   :  { %1016 = vst [vmem:[%s1486_s3 + $0x28] sm:$0xff] %v960_v36   ;;  %1024 = vst [vmem:[%s1486_s3 + $0x68] sm:$0xff] %v1000_v38   ;;  %v1081_v44 = vadd.f32 %v1080_v39, %v1079_v35  ;;  %v1129_v47 = vadd.f32 %v1128_v40, %v1127_v37 }
 0x17c   :  { %v1082_v41 = vpop.f32.mrf.mxu0  ;;  %v1130_v42 = vpop.f32.mrf.mxu1 }
 0x17e   :  { %v1083_v43 = vpop.f32.mrf.mxu0  ;;  %v1131_v46 = vpop.f32.mrf.mxu1 }
 0x17f   :  { %v1084_v45 = vadd.f32 %v1083_v43, %v1082_v41  ;;  %v1132_v48 = vadd.f32 %v1131_v46, %v1130_v42 }
 0x180   :  { %v1085_v49 = vpop.f32.mrf.mxu0  ;;  %v1133_v51 = vpop.f32.mrf.mxu1 }
 0x181   :  { %v965_v50 = vpack.c.bf16 %v1084_v45, %v1081_v44  ;;  %v1005_v52 = vpack.c.bf16 %v1132_v48, %v1129_v47 }
 0x182   :  { %v1086_v53 = vpop.f32.mrf.mxu0  ;;  %v1134_v54 = vpop.f32.mrf.mxu1 }
 0x183   :  { %1017 = vst [vmem:[%s1486_s3 + $0x30] sm:$0xff] %v965_v50   ;;  %1025 = vst [vmem:[%s1486_s3 + $0x70] sm:$0xff] %v1005_v52   ;;  %v1087_v58 = vadd.f32 %v1086_v53, %v1085_v49  ;;  %v1135_v61 = vadd.f32 %v1134_v54, %v1133_v51 }
 0x184   :  { %v1088_v55 = vpop.f32.mrf.mxu0  ;;  %v1136_v56 = vpop.f32.mrf.mxu1 }
 0x186   :  { %v1089_v57 = vpop.f32.mrf.mxu0  ;;  %v1137_v60 = vpop.f32.mrf.mxu1 }
 0x187   :  { %v1090_v59 = vadd.f32 %v1089_v57, %v1088_v55  ;;  %v1138_v62 = vadd.f32 %v1137_v60, %v1136_v56 }
 0x189   :  { %v970_v63 = vpack.c.bf16 %v1090_v59, %v1087_v58  ;;  %v1010_v0 = vpack.c.bf16 %v1138_v62, %v1135_v61 }
 0x18b   :  { %1018 = vst [vmem:[%s1486_s3 + $0x38] sm:$0xff] %v970_v63   ;;  %1026 = vst [vmem:[%s1486_s3 + $0x78] sm:$0xff] %v1010_v0  }

// kernel: _lambda_.4
= control target key start
LH: loop header
LB: loop body
LE: loop exit
PB: predicated region body
PF: predicated region fallthrough
CT: control target
= control target key end

     0   :  { %v1528_v1 = vmov 0   ;;  %s1918_s1 = inlined_call_operand.vmem [shape: bf16[256,128], index: 1, kind: input, shape index: {}]   ;;  %s1919_s0 = inlined_call_operand.vmem [shape: bf16[256,256], index: 0, kind: input, shape index: {}]   ;;  %s1920_s2 = inlined_call_operand.vmem [shape: f32[256,1], index: 2, kind: input, shape index: {}]   ;;  %s1921_s3 = inlined_call_operand.vmem [shape: f32[1,128], index: 3, kind: input, shape index: {}]   ;;  %s1922_s4 = inlined_call_operand.vmem [shape: bf16[256,128], index: 4, kind: output, shape index: {}]  }
   0x1   :  { %v1464_v0 = vld [vmem:[%s1918_s1 + $0x78] sm:$0xff]   ;;  %1463 = vset.pattern.permute.xlu1 %v1528_v1  ;;  %1462 = vset.pattern.permute.xlu0 %v1528_v1  ;;  %v1466_v3 = vld [vmem:[%s1918_s1 + $0x70] sm:$0xff]   ;;  %v1468_v5 = vld [vmem:[%s1918_s1 + $0x68] sm:$0xff]  }
   0x2   :  { %v1465_v2 = vld [vmem:[%s1918_s1 + $0x38] sm:$0xff]   ;;  %1333 = vmatprep.subr.bf16.mxu0 %v1464_v0  ;;  %1445 = vmatprep.subr.bf16.mxu1 %v1464_v0  ;;  %v1467_v4 = vld [vmem:[%s1918_s1 + $0x30] sm:$0xff]   ;;  %v1469_v6 = vld [vmem:[%s1918_s1 + $0x28] sm:$0xff]  }
   0x3   :  { %1334 = vmatpush3.bf16.msra.mxu0 %v1465_v2  ;;  %1453 = vmatpush3.bf16.msra.mxu1 %v1465_v2  ;;  %v1470_v7 = vld [vmem:[%s1918_s1 + $0x60] sm:$0xff]   ;;  %v1472_v9 = vld [vmem:[%s1918_s1 + $0x58] sm:$0xff]   ;;  %v1474_v11 = vld [vmem:[%s1918_s1 + $0x50] sm:$0xff]  }
   0x4   :  { %1335 = vmatprep.subr.bf16.mxu0 %v1466_v3  ;;  %1446 = vmatprep.subr.bf16.mxu1 %v1466_v3  ;;  %v1471_v8 = vld [vmem:[%s1918_s1 + $0x20] sm:$0xff]   ;;  %v1473_v10 = vld [vmem:[%s1918_s1 + $0x18] sm:$0xff]   ;;  %v1475_v14 = vld [vmem:[%s1918_s1 + $0x10] sm:$0xff]  }
   0x5   :  { %v1482_v12 = vld [vmem:[%s1919_s0 + $0x4] ss:$8 sps:$4 sm:$0xff]   ;;  %v668_v16 = vld [vmem:[%s1920_s2 + $0x10] sm:$0xff]  ;;  %v669_v20 = vld [vmem:[%s1920_s2 + $0x18] sm:$0xff] }
   0x6   :  { %v1485_v13 = vld [vmem:[%s1919_s0 + $0x84] ss:$8 sps:$4 sm:$0xff]   ;;  %438 = vmatprep.mubr.bf16.mxu0 %v1482_v12  ;;  %710 = vperm.xlu1 %1463, %v668_v16   ;;  %v1480_v25 = vld [vmem:[%s1919_s0] ss:$8 sps:$4 sm:$0xff]   ;;  %v1486_v27 = vld [vmem:[%s1919_s0 + $0x14] ss:$8 sps:$4 sm:$0xff]  }
   0x7   :  { %1336 = vmatpush3.bf16.msra.mxu0 %v1467_v4  ;;  %1454 = vmatpush3.bf16.msra.mxu1 %v1467_v4  ;;  %v1476_v15 = vld [vmem:[%s1918_s1 + $0x48] sm:$0xff]   ;;  %v666_v17 = vld [vmem:[%s1920_s2] sm:$0xff]  ;;  %v1488_v28 = vld [vmem:[%s1919_s0 + $0x94] ss:$8 sps:$4 sm:$0xff]  }
   0x8   :  { %1337 = vmatprep.subr.bf16.mxu0 %v1468_v5  ;;  %1447 = vmatprep.subr.bf16.mxu1 %v1468_v5  ;;  %v1477_v18 = vld [vmem:[%s1918_s1 + $0x8] sm:$0xff]   ;;  %v1478_v19 = vld [vmem:[%s1918_s1 + $0x40] sm:$0xff]   ;;  %v673_v29 = vld [vmem:[%s1920_s2 + $0x38] sm:$0xff] }
   0x9   :  { %502 = vmatprep.mubr.bf16.mxu1 %v1485_v13  ;;  %700 = vperm.xlu0 %1462, %v666_v17   ;;  %v1479_v21 = vld [vmem:[%s1918_s1] sm:$0xff]   ;;  %v667_v22 = vld [vmem:[%s1920_s2 + $0x8] sm:$0xff]  ;;  %v672_v30 = vld [vmem:[%s1920_s2 + $0x30] sm:$0xff] }
   0xa   :  { %715 = vperm.xlu1 %1463, %v669_v20   ;;  %v671_v23 = vld [vmem:[%s1920_s2 + $0x28] sm:$0xff]  ;;  %v670_v24 = vld [vmem:[%s1920_s2 + $0x20] sm:$0xff]  ;;  %v1490_v31 = vld [vmem:[%s1919_s0 + $0x10] ss:$8 sps:$4 sm:$0xff]  }
   0xb   :  { %1338 = vmatpush3.bf16.msra.mxu0 %v1469_v6  ;;  %1455 = vmatpush3.bf16.msra.mxu1 %v1469_v6  ;;  %v1483_v26 = vld [vmem:[%s1919_s0 + $0x80] ss:$8 sps:$4 sm:$0xff]   ;;  %v1491_v32 = vld [vmem:[%s1919_s0 + $0x90] ss:$8 sps:$4 sm:$0xff]   ;;  %v1492_v35 = vld [vmem:[%s1919_s0 + $0x24] ss:$8 sps:$4 sm:$0xff]  }
   0xc   :  { %1339 = vmatprep.subr.bf16.mxu0 %v1470_v7  ;;  %1448 = vmatprep.subr.bf16.mxu1 %v1470_v7  ;;  %v675_v33 = vld [vmem:[%s1920_s2 + $0x48] sm:$0xff]  ;;  %v674_v34 = vld [vmem:[%s1920_s2 + $0x40] sm:$0xff]  ;;  %v677_v37 = vld [vmem:[%s1920_s2 + $0x58] sm:$0xff] }
   0xd   :  { %705 = vperm.xlu0 %1462, %v667_v22   ;;  %v1494_v36 = vld [vmem:[%s1919_s0 + $0xa4] ss:$8 sps:$4 sm:$0xff]   ;;  %v676_v38 = vld [vmem:[%s1920_s2 + $0x50] sm:$0xff]  ;;  %v1496_v41 = vld [vmem:[%s1919_s0 + $0x20] ss:$8 sps:$4 sm:$0xff]  }
   0xe   :  { %725 = vperm.xlu1 %1463, %v671_v23   ;;  %v679_v39 = vld [vmem:[%s1920_s2 + $0x68] sm:$0xff]  ;;  %v678_v40 = vld [vmem:[%s1920_s2 + $0x60] sm:$0xff]  ;;  %v1498_v43 = vld [vmem:[%s1919_s0 + $0x34] ss:$8 sps:$4 sm:$0xff]  }
   0xf   :  { %1340 = vmatpush3.bf16.msra.mxu0 %v1471_v8  ;;  %1456 = vmatpush3.bf16.msra.mxu1 %v1471_v8  ;;  %v1497_v42 = vld [vmem:[%s1919_s0 + $0xa0] ss:$8 sps:$4 sm:$0xff]   ;;  %v1500_v44 = vld [vmem:[%s1919_s0 + $0xb4] ss:$8 sps:$4 sm:$0xff]   ;;  %v1502_v49 = vld [vmem:[%s1919_s0 + $0x30] ss:$8 sps:$4 sm:$0xff]  }
  0x10   :  { %1341 = vmatprep.subr.bf16.mxu0 %v1472_v9  ;;  %1449 = vmatprep.subr.bf16.mxu1 %v1472_v9  ;;  %v681_v45 = vld [vmem:[%s1920_s2 + $0x78] sm:$0xff]  ;;  %v680_v46 = vld [vmem:[%s1920_s2 + $0x70] sm:$0xff]  ;;  %v683_v47 = vld [vmem:[%s1920_s2 + $0x88] sm:$0xff] }
  0x11   :  { %720 = vperm.xlu0 %1462, %v670_v24   ;;  %v682_v48 = vld [vmem:[%s1920_s2 + $0x80] sm:$0xff]  ;;  %v1503_v50 = vld [vmem:[%s1919_s0 + $0xb0] ss:$8 sps:$4 sm:$0xff]   ;;  %v687_v55 = vld [vmem:[%s1920_s2 + $0xa8] sm:$0xff] }
  0x12   :  { %735 = vperm.xlu1 %1463, %v673_v29   ;;  %v1504_v51 = vld [vmem:[%s1919_s0 + $0x44] ss:$8 sps:$4 sm:$0xff]   ;;  %v685_v53 = vld [vmem:[%s1920_s2 + $0x98] sm:$0xff]  ;;  %v684_v54 = vld [vmem:[%s1920_s2 + $0x90] sm:$0xff] }
  0x13   :  { %1342 = vmatpush3.bf16.msra.mxu0 %v1473_v10  ;;  %1457 = vmatpush3.bf16.msra.mxu1 %v1473_v10  ;;  %v1506_v52 = vld [vmem:[%s1919_s0 + $0xc4] ss:$8 sps:$4 sm:$0xff]   ;;  %v1508_v57 = vld [vmem:[%s1919_s0 + $0x40] ss:$8 sps:$4 sm:$0xff]   ;;  %v1510_v59 = vld [vmem:[%s1919_s0 + $0x54] ss:$8 sps:$4 sm:$0xff]  }
  0x14   :  { %1343 = vmatprep.subr.bf16.mxu0 %v1474_v11  ;;  %1450 = vmatprep.subr.bf16.mxu1 %v1474_v11  ;;  %v686_v56 = vld [vmem:[%s1920_s2 + $0xa0] sm:$0xff]  ;;  %v1512_v60 = vld [vmem:[%s1919_s0 + $0xd4] ss:$8 sps:$4 sm:$0xff]   ;;  %v691_v63 = vld [vmem:[%s1920_s2 + $0xc8] sm:$0xff] }
  0x15   :  { %730 = vperm.xlu0 %1462, %v672_v30   ;;  %v1509_v58 = vld [vmem:[%s1919_s0 + $0xc0] ss:$8 sps:$4 sm:$0xff]   ;;  %v689_v61 = vld [vmem:[%s1920_s2 + $0xb8] sm:$0xff]  ;;  %v688_v62 = vld [vmem:[%s1920_s2 + $0xb0] sm:$0xff] }
  0x16   :  { %745 = vperm.xlu1 %1463, %v675_v33   ;;  %v690_v0 = vld [vmem:[%s1920_s2 + $0xc0] sm:$0xff]  ;;  %v1514_v1 = vld [vmem:[%s1919_s0 + $0x50] ss:$8 sps:$4 sm:$0xff]   ;;  %v695_v7 = vld [vmem:[%s1920_s2 + $0xe8] sm:$0xff] }
  0x17   :  { %1344 = vmatpush3.bf16.msra.mxu0 %v1475_v14  ;;  %1458 = vmatpush3.bf16.msra.mxu1 %v1475_v14  ;;  %v1515_v2 = vld [vmem:[%s1919_s0 + $0xd0] ss:$8 sps:$4 sm:$0xff]   ;;  %v1516_v3 = vld [vmem:[%s1919_s0 + $0x64] ss:$8 sps:$4 sm:$0xff]   ;;  %v1520_v9 = vld [vmem:[%s1919_s0 + $0x60] ss:$8 sps:$4 sm:$0xff]  }
  0x18   :  { %1345 = vmatprep.subr.bf16.mxu0 %v1476_v15  ;;  %1451 = vmatprep.subr.bf16.mxu1 %v1476_v15  ;;  %v1518_v4 = vld [vmem:[%s1919_s0 + $0xe4] ss:$8 sps:$4 sm:$0xff]   ;;  %v693_v5 = vld [vmem:[%s1920_s2 + $0xd8] sm:$0xff]  ;;  %v692_v6 = vld [vmem:[%s1920_s2 + $0xd0] sm:$0xff] }
  0x19   :  { %740 = vperm.xlu0 %1462, %v674_v34   ;;  %v694_v8 = vld [vmem:[%s1920_s2 + $0xe0] sm:$0xff]  ;;  %v1522_v11 = vld [vmem:[%s1919_s0 + $0x74] ss:$8 sps:$4 sm:$0xff]   ;;  %v1526_v15 = vld [vmem:[%s1919_s0 + $0x70] ss:$8 sps:$4 sm:$0xff]  }
  0x1a   :  { %755 = vperm.xlu1 %1463, %v677_v37   ;;  %v1521_v10 = vld [vmem:[%s1919_s0 + $0xe0] ss:$8 sps:$4 sm:$0xff]   ;;  %v1524_v12 = vld [vmem:[%s1919_s0 + $0xf4] ss:$8 sps:$4 sm:$0xff]   ;;  %v1527_v16 = vld [vmem:[%s1919_s0 + $0xf0] ss:$8 sps:$4 sm:$0xff]  }
  0x1b   :  { %1346 = vmatpush3.bf16.msra.mxu0 %v1477_v18  ;;  %1459 = vmatpush3.bf16.msra.mxu1 %v1477_v18  ;;  %v697_v13 = vld [vmem:[%s1920_s2 + $0xf8] sm:$0xff]  ;;  %v696_v14 = vld [vmem:[%s1920_s2 + $0xf0] sm:$0xff] }
  0x1c   :  { %1347 = vmatprep.subr.bf16.mxu0 %v1478_v19  ;;  %1452 = vmatprep.subr.bf16.mxu1 %v1478_v19 }
  0x1d   :  { %750 = vperm.xlu0 %1462, %v676_v38  }
  0x1e   :  { %765 = vperm.xlu1 %1463, %v679_v39  }
  0x1f   :  { %1348 = vmatpush3.bf16.msra.mxu0 %v1479_v21  ;;  %1460 = vmatpush3.bf16.msra.mxu1 %v1479_v21 }
  0x21   :  { %760 = vperm.xlu0 %1462, %v678_v40  }
  0x22   :  { %439 = vmatmul.mubr.bf16.vlgmr.msra.gmra.mxu0 %v1480_v25  ;;  %503 = vmatmul.mubr.bf16.vlgmr.msra.gmra.mxu1 %v1483_v26 }
  0x23   :  { %446 = vmatprep.mubr.bf16.mxu0 %v1486_v27  ;;  %510 = vmatprep.mubr.bf16.mxu1 %v1488_v28 }
  0x24   :  { %775 = vperm.xlu1 %1463, %v681_v45  }
  0x25   :  { %770 = vperm.xlu0 %1462, %v680_v46  }
  0x28   :  { %785 = vperm.xlu1 %1463, %v683_v47  }
  0x29   :  { %780 = vperm.xlu0 %1462, %v682_v48  }
  0x2a   :  { %447 = vmatmul.mubr.bf16.gmra.mxu0 %v1490_v31  ;;  %511 = vmatmul.mubr.bf16.gmra.mxu1 %v1491_v32 }
  0x2b   :  { %454 = vmatprep.mubr.bf16.mxu0 %v1492_v35  ;;  %518 = vmatprep.mubr.bf16.mxu1 %v1494_v36 }
  0x2c   :  { %795 = vperm.xlu1 %1463, %v685_v53  }
  0x2d   :  { %790 = vperm.xlu0 %1462, %v684_v54  }
  0x30   :  { %805 = vperm.xlu1 %1463, %v687_v55  }
  0x31   :  { %800 = vperm.xlu0 %1462, %v686_v56  }
  0x32   :  { %455 = vmatmul.mubr.bf16.gmra.mxu0 %v1496_v41  ;;  %519 = vmatmul.mubr.bf16.gmra.mxu1 %v1497_v42 }
  0x33   :  { %462 = vmatprep.mubr.bf16.mxu0 %v1498_v43  ;;  %526 = vmatprep.mubr.bf16.mxu1 %v1500_v44  ;;  %v1823_v44 = vld [vmem:[%s1921_s3] ss:$0 sm:$0xff] }
  0x34   :  { %815 = vperm.xlu1 %1463, %v689_v61  }
  0x35   :  { %810 = vperm.xlu0 %1462, %v688_v62  }
  0x38   :  { %825 = vperm.xlu1 %1463, %v691_v63  }
  0x39   :  { %820 = vperm.xlu0 %1462, %v690_v0  }
  0x3a   :  { %463 = vmatmul.mubr.bf16.gmra.mxu0 %v1502_v49  ;;  %527 = vmatmul.mubr.bf16.gmra.mxu1 %v1503_v50 }
  0x3b   :  { %470 = vmatprep.mubr.bf16.mxu0 %v1504_v51  ;;  %534 = vmatprep.mubr.bf16.mxu1 %v1506_v52 }
  0x3c   :  { %835 = vperm.xlu1 %1463, %v693_v5  }
  0x3d   :  { %830 = vperm.xlu0 %1462, %v692_v6  }
  0x40   :  { %845 = vperm.xlu1 %1463, %v695_v7  }
  0x41   :  { %840 = vperm.xlu0 %1462, %v694_v8  }
  0x42   :  { %471 = vmatmul.mubr.bf16.gmra.mxu0 %v1508_v57  ;;  %535 = vmatmul.mubr.bf16.gmra.mxu1 %v1509_v58 }
  0x43   :  { %478 = vmatprep.mubr.bf16.mxu0 %v1510_v59  ;;  %542 = vmatprep.mubr.bf16.mxu1 %v1512_v60 }
  0x44   :  { %855 = vperm.xlu1 %1463, %v697_v13  }
  0x45   :  { %850 = vperm.xlu0 %1462, %v696_v14  }
  0x4a   :  { %479 = vmatmul.mubr.bf16.gmra.mxu0 %v1514_v1  ;;  %543 = vmatmul.mubr.bf16.gmra.mxu1 %v1515_v2 }
  0x4b   :  { %486 = vmatprep.mubr.bf16.mxu0 %v1516_v3  ;;  %550 = vmatprep.mubr.bf16.mxu1 %v1518_v4 }
  0x52   :  { %487 = vmatmul.mubr.bf16.gmra.mxu0 %v1520_v9  ;;  %551 = vmatmul.mubr.bf16.gmra.mxu1 %v1521_v10 }
  0x53   :  { %494 = vmatprep.mubr.bf16.mxu0 %v1522_v11  ;;  %558 = vmatprep.mubr.bf16.mxu1 %v1524_v12 }
  0x5a   :  { %495 = vmatmul.mubr.bf16.gmra.mxu0 %v1526_v15  ;;  %559 = vmatmul.mubr.bf16.gmra.mxu1 %v1527_v16 }
  0x81   :  { %v711_v18 = vpop.permute.xlu1 %710 }
  0x84   :  { %v701_v17 = vpop.permute.xlu0 %700 }
  0x85   :  { %v1794_v20 = vpop.permute.xlu1 %715 }
  0x88   :  { %v706_v19 = vpop.permute.xlu0 %705 }
  0x89   :  { %v1798_v22 = vpop.permute.xlu1 %725 }
  0x8c   :  { %v1796_v21 = vpop.permute.xlu0 %720 }
  0x8d   :  { %v1802_v24 = vpop.permute.xlu1 %735 }
  0x90   :  { %v1800_v23 = vpop.permute.xlu0 %730 }
  0x91   :  { %v1806_v26 = vpop.permute.xlu1 %745 }
  0x94   :  { %v1804_v25 = vpop.permute.xlu0 %740 }
  0x95   :  { %v1810_v28 = vpop.permute.xlu1 %755 }
  0x98   :  { %v1808_v27 = vpop.permute.xlu0 %750 }
  0x99   :  { %v1814_v30 = vpop.permute.xlu1 %765 }
  0x9c   :  { %v1812_v29 = vpop.permute.xlu0 %760 }
  0x9f   :  { %v1818_v34 = vpop.permute.xlu1 %775 }
  0xa0   :  { %v1816_v31 = vpop.permute.xlu0 %770 }
  0xa3   :  { %v786_v47 = vpop.permute.xlu1 %785 }
  0xa4   :  { %v781_v37 = vpop.permute.xlu0 %780 }
  0xa7   :  { %v796_v15 = vpop.permute.xlu1 %795 }
  0xa8   :  { %v791_v0 = vpop.permute.xlu0 %790 }
  0xe2   :  { %v1349_v32 = vpop.f32.mrf.mxu0  ;;  %v1397_v33 = vpop.f32.mrf.mxu1 }
  0xe4   :  { %v1350_v35 = vpop.f32.mrf.mxu0  ;;  %v1398_v36 = vpop.f32.mrf.mxu1 }
  0xe5   :  { %v1351_v38 = vadd.f32 %v1350_v35, %v1349_v32  ;;  %v1399_v39 = vadd.f32 %v1398_v36, %v1397_v33  ;;  %v801_v35 = vpop.permute.xlu0 %800 }
  0xe6   :  { %v1352_v40 = vpop.f32.mrf.mxu0  ;;  %v1400_v41 = vpop.f32.mrf.mxu1 }
  0xe7   :  { %v858_v42 = vmul.f32 %v1351_v38, %v701_v17  ;;  %v874_v43 = vmul.f32 %v1399_v39, %v781_v37 }
  0xe8   :  { %v1353_v45 = vpop.f32.mrf.mxu0  ;;  %v1401_v46 = vpop.f32.mrf.mxu1 }
  0xe9   :  { %v1354_v48 = vadd.f32 %v1353_v45, %v1352_v40  ;;  %v1402_v49 = vadd.f32 %v1401_v46, %v1400_v41  ;;  %v897_v52 = vadd.f32 %v1823_v44, %v858_v42  ;;  %v913_v53 = vadd.f32 %v1823_v44, %v874_v43 }
  0xea   :  { %v1355_v50 = vpop.f32.mrf.mxu0  ;;  %v1403_v51 = vpop.f32.mrf.mxu1 }
  0xeb   :  { %v859_v54 = vmul.f32 %v1354_v48, %v706_v19  ;;  %v875_v55 = vmul.f32 %v1402_v49, %v786_v47  ;;  %v929_v1 = vmax.f32 %v897_v52, 0.0  ;;  %v945_v2 = vmax.f32 %v913_v53, 0.0 }
  0xec   :  { %v1356_v56 = vpop.f32.mrf.mxu0  ;;  %v1404_v57 = vpop.f32.mrf.mxu1 }
  0xed   :  { %v898_v58 = vadd.f32 %v1823_v44, %v859_v54  ;;  %v914_v59 = vadd.f32 %v1823_v44, %v875_v55  ;;  %v1357_v60 = vadd.f32 %v1356_v56, %v1355_v50  ;;  %v1405_v61 = vadd.f32 %v1404_v57, %v1403_v51  ;;  %v806_v50 = vpop.permute.xlu1 %805 }
  0xee   :  { %v1358_v62 = vpop.f32.mrf.mxu0  ;;  %v1406_v63 = vpop.f32.mrf.mxu1 }
  0xef   :  { %v930_v3 = vmax.f32 %v898_v58, 0.0  ;;  %v946_v4 = vmax.f32 %v914_v59, 0.0  ;;  %v860_v5 = vmul.f32 %v1357_v60, %v711_v18  ;;  %v876_v6 = vmul.f32 %v1405_v61, %v791_v0 }
  0xf0   :  { %v1359_v7 = vpop.f32.mrf.mxu0  ;;  %v1407_v8 = vpop.f32.mrf.mxu1 }
  0xf1   :  { %v1241_v9 = vpack.c.bf16 %v930_v3, %v929_v1  ;;  %v1281_v10 = vpack.c.bf16 %v946_v4, %v945_v2  ;;  %v1360_v11 = vadd.f32 %v1359_v7, %v1358_v62  ;;  %v1408_v12 = vadd.f32 %v1407_v8, %v1406_v63 }
  0xf2   :  { %v1361_v13 = vpop.f32.mrf.mxu0  ;;  %v1409_v14 = vpop.f32.mrf.mxu1  ;;  %v899_v16 = vadd.f32 %v1823_v44, %v860_v5  ;;  %v915_v17 = vadd.f32 %v1823_v44, %v876_v6 }
  0xf3   :  { %1242 = vst [vmem:[%s1922_s4] sm:$0xff] %v1241_v9   ;;  %1325 = vst [vmem:[%s1922_s4 + $0x40] sm:$0xff] %v1281_v10   ;;  %v861_v18 = vmul.f32 %v1360_v11, %v1794_v20  ;;  %v877_v19 = vmul.f32 %v1408_v12, %v796_v15 }
  0xf4   :  { %v1362_v32 = vpop.f32.mrf.mxu0  ;;  %v1410_v33 = vpop.f32.mrf.mxu1  ;;  %v931_v45 = vmax.f32 %v899_v16, 0.0  ;;  %v947_v46 = vmax.f32 %v915_v17, 0.0 }
  0xf5   :  { %v1363_v36 = vadd.f32 %v1362_v32, %v1361_v13  ;;  %v1411_v37 = vadd.f32 %v1410_v33, %v1409_v14  ;;  %v900_v38 = vadd.f32 %v1823_v44, %v861_v18  ;;  %v916_v39 = vadd.f32 %v1823_v44, %v877_v19  ;;  %v816_v18 = vpop.permute.xlu1 %815 }
  0xf6   :  { %v1364_v40 = vpop.f32.mrf.mxu0  ;;  %v1412_v41 = vpop.f32.mrf.mxu1 }
  0xf7   :  { %v862_v42 = vmul.f32 %v1363_v36, %v1796_v21  ;;  %v878_v43 = vmul.f32 %v1411_v37, %v801_v35  ;;  %v932_v47 = vmax.f32 %v900_v38, 0.0  ;;  %v948_v48 = vmax.f32 %v916_v39, 0.0 }
  0xf8   :  { %v1365_v20 = vpop.f32.mrf.mxu0  ;;  %v1413_v49 = vpop.f32.mrf.mxu1 }
  0xf9   :  { %v1366_v51 = vadd.f32 %v1365_v20, %v1364_v40  ;;  %v1414_v52 = vadd.f32 %v1413_v49, %v1412_v41  ;;  %v1246_v53 = vpack.c.bf16 %v932_v47, %v931_v45  ;;  %v1286_v54 = vpack.c.bf16 %v948_v48, %v947_v46 }
  0xfa   :  { %v1367_v55 = vpop.f32.mrf.mxu0  ;;  %v1415_v56 = vpop.f32.mrf.mxu1  ;;  %v901_v57 = vadd.f32 %v1823_v44, %v862_v42  ;;  %v917_v58 = vadd.f32 %v1823_v44, %v878_v43 }
  0xfb   :  { %v863_v21 = vmul.f32 %v1366_v51, %v1798_v22  ;;  %v879_v59 = vmul.f32 %v1414_v52, %v806_v50  ;;  %1318 = vst [vmem:[%s1922_s4 + $0x8] sm:$0xff] %v1246_v53   ;;  %1326 = vst [vmem:[%s1922_s4 + $0x48] sm:$0xff] %v1286_v54   ;;  %v811_v22 = vpop.permute.xlu0 %810  ;;  %v826_v51 = vpop.permute.xlu1 %825 }
  0xfc   :  { %v1368_v60 = vpop.f32.mrf.mxu0  ;;  %v1416_v61 = vpop.f32.mrf.mxu1  ;;  %v933_v4 = vmax.f32 %v901_v57, 0.0  ;;  %v949_v5 = vmax.f32 %v917_v58, 0.0 }
  0xfd   :  { %v902_v62 = vadd.f32 %v1823_v44, %v863_v21  ;;  %v918_v63 = vadd.f32 %v1823_v44, %v879_v59  ;;  %v1369_v0 = vadd.f32 %v1368_v60, %v1367_v55  ;;  %v1417_v1 = vadd.f32 %v1416_v61, %v1415_v56 }
  0xfe   :  { %v1370_v2 = vpop.f32.mrf.mxu0  ;;  %v1418_v3 = vpop.f32.mrf.mxu1 }
  0xff   :  { %v934_v6 = vmax.f32 %v902_v62, 0.0  ;;  %v950_v7 = vmax.f32 %v918_v63, 0.0  ;;  %v864_v8 = vmul.f32 %v1369_v0, %v1800_v23  ;;  %v880_v9 = vmul.f32 %v1417_v1, %v811_v22  ;;  %v821_v37 = vpop.permute.xlu0 %820 }
 0x100   :  { %v1371_v10 = vpop.f32.mrf.mxu0  ;;  %v1419_v11 = vpop.f32.mrf.mxu1 }
 0x101   :  { %v1251_v12 = vpack.c.bf16 %v934_v6, %v933_v4  ;;  %v1291_v13 = vpack.c.bf16 %v950_v7, %v949_v5  ;;  %v1372_v14 = vadd.f32 %v1371_v10, %v1370_v2  ;;  %v1420_v15 = vadd.f32 %v1419_v11, %v1418_v3 }
 0x102   :  { %v1373_v16 = vpop.f32.mrf.mxu0  ;;  %v1421_v17 = vpop.f32.mrf.mxu1  ;;  %v903_v23 = vadd.f32 %v1823_v44, %v864_v8  ;;  %v919_v19 = vadd.f32 %v1823_v44, %v880_v9 }
 0x103   :  { %1319 = vst [vmem:[%s1922_s4 + $0x10] sm:$0xff] %v1251_v12   ;;  %1327 = vst [vmem:[%s1922_s4 + $0x50] sm:$0xff] %v1291_v13   ;;  %v865_v32 = vmul.f32 %v1372_v14, %v1802_v24  ;;  %v881_v33 = vmul.f32 %v1420_v15, %v816_v18 }
 0x104   :  { %v1374_v35 = vpop.f32.mrf.mxu0  ;;  %v1422_v36 = vpop.f32.mrf.mxu1  ;;  %v935_v47 = vmax.f32 %v903_v23, 0.0  ;;  %v951_v48 = vmax.f32 %v919_v19, 0.0 }
 0x105   :  { %v1375_v38 = vadd.f32 %v1374_v35, %v1373_v16  ;;  %v1423_v39 = vadd.f32 %v1422_v36, %v1421_v17  ;;  %v904_v40 = vadd.f32 %v1823_v44, %v865_v32  ;;  %v920_v41 = vadd.f32 %v1823_v44, %v881_v33  ;;  %v836_v17 = vpop.permute.xlu1 %835 }
 0x106   :  { %v1376_v42 = vpop.f32.mrf.mxu0  ;;  %v1424_v43 = vpop.f32.mrf.mxu1 }
 0x107   :  { %v866_v45 = vmul.f32 %v1375_v38, %v1804_v25  ;;  %v882_v46 = vmul.f32 %v1423_v39, %v821_v37  ;;  %v936_v20 = vmax.f32 %v904_v40, 0.0  ;;  %v952_v49 = vmax.f32 %v920_v41, 0.0 }
 0x108   :  { %v1377_v24 = vpop.f32.mrf.mxu0  ;;  %v1425_v50 = vpop.f32.mrf.mxu1 }
 0x109   :  { %v1378_v52 = vadd.f32 %v1377_v24, %v1376_v42  ;;  %v1426_v53 = vadd.f32 %v1425_v50, %v1424_v43  ;;  %v1256_v54 = vpack.c.bf16 %v936_v20, %v935_v47  ;;  %v1296_v55 = vpack.c.bf16 %v952_v49, %v951_v48  ;;  %v846_v49 = vpop.permute.xlu1 %845 }
 0x10a   :  { %v1379_v56 = vpop.f32.mrf.mxu0  ;;  %v1427_v57 = vpop.f32.mrf.mxu1  ;;  %v905_v58 = vadd.f32 %v1823_v44, %v866_v45  ;;  %v921_v21 = vadd.f32 %v1823_v44, %v882_v46 }
 0x10b   :  { %v867_v25 = vmul.f32 %v1378_v52, %v1806_v26  ;;  %v883_v59 = vmul.f32 %v1426_v53, %v826_v51  ;;  %1320 = vst [vmem:[%s1922_s4 + $0x18] sm:$0xff] %v1256_v54   ;;  %1328 = vst [vmem:[%s1922_s4 + $0x58] sm:$0xff] %v1296_v55   ;;  %v831_v26 = vpop.permute.xlu0 %830 }
 0x10c   :  { %v1380_v60 = vpop.f32.mrf.mxu0  ;;  %v1428_v61 = vpop.f32.mrf.mxu1  ;;  %v937_v22 = vmax.f32 %v905_v58, 0.0  ;;  %v953_v4 = vmax.f32 %v921_v21, 0.0 }
 0x10d   :  { %v906_v62 = vadd.f32 %v1823_v44, %v867_v25  ;;  %v922_v63 = vadd.f32 %v1823_v44, %v883_v59  ;;  %v1381_v0 = vadd.f32 %v1380_v60, %v1379_v56  ;;  %v1429_v1 = vadd.f32 %v1428_v61, %v1427_v57 }
 0x10e   :  { %v1382_v2 = vpop.f32.mrf.mxu0  ;;  %v1430_v3 = vpop.f32.mrf.mxu1 }
 0x10f   :  { %v938_v5 = vmax.f32 %v906_v62, 0.0  ;;  %v954_v6 = vmax.f32 %v922_v63, 0.0  ;;  %v868_v7 = vmul.f32 %v1381_v0, %v1808_v27  ;;  %v884_v8 = vmul.f32 %v1429_v1, %v831_v26  ;;  %v841_v35 = vpop.permute.xlu0 %840 }
 0x110   :  { %v1383_v9 = vpop.f32.mrf.mxu0  ;;  %v1431_v10 = vpop.f32.mrf.mxu1 }
 0x111   :  { %v1261_v11 = vpack.c.bf16 %v938_v5, %v937_v22  ;;  %v1301_v12 = vpack.c.bf16 %v954_v6, %v953_v4  ;;  %v1384_v13 = vadd.f32 %v1383_v9, %v1382_v2  ;;  %v1432_v14 = vadd.f32 %v1431_v10, %v1430_v3  ;;  %v856_v10 = vpop.permute.xlu1 %855 }
 0x112   :  { %v1385_v15 = vpop.f32.mrf.mxu0  ;;  %v1433_v16 = vpop.f32.mrf.mxu1  ;;  %v907_v27 = vadd.f32 %v1823_v44, %v868_v7  ;;  %v923_v18 = vadd.f32 %v1823_v44, %v884_v8 }
 0x113   :  { %1321 = vst [vmem:[%s1922_s4 + $0x20] sm:$0xff] %v1261_v11   ;;  %1329 = vst [vmem:[%s1922_s4 + $0x60] sm:$0xff] %v1301_v12   ;;  %v869_v23 = vmul.f32 %v1384_v13, %v1810_v28  ;;  %v885_v19 = vmul.f32 %v1432_v14, %v836_v17 }
 0x114   :  { %v1386_v32 = vpop.f32.mrf.mxu0  ;;  %v1434_v33 = vpop.f32.mrf.mxu1  ;;  %v939_v45 = vmax.f32 %v907_v27, 0.0  ;;  %v955_v46 = vmax.f32 %v923_v18, 0.0 }
 0x115   :  { %v1387_v36 = vadd.f32 %v1386_v32, %v1385_v15  ;;  %v1435_v37 = vadd.f32 %v1434_v33, %v1433_v16  ;;  %v908_v38 = vadd.f32 %v1823_v44, %v869_v23  ;;  %v924_v39 = vadd.f32 %v1823_v44, %v885_v19 }
 0x116   :  { %v1388_v40 = vpop.f32.mrf.mxu0  ;;  %v1436_v41 = vpop.f32.mrf.mxu1 }
 0x117   :  { %v870_v42 = vmul.f32 %v1387_v36, %v1812_v29  ;;  %v886_v43 = vmul.f32 %v1435_v37, %v841_v35  ;;  %v940_v47 = vmax.f32 %v908_v38, 0.0  ;;  %v956_v48 = vmax.f32 %v924_v39, 0.0 }
 0x118   :  { %v1389_v28 = vpop.f32.mrf.mxu0  ;;  %v1437_v20 = vpop.f32.mrf.mxu1 }
 0x119   :  { %v1390_v24 = vadd.f32 %v1389_v28, %v1388_v40  ;;  %v1438_v50 = vadd.f32 %v1437_v20, %v1436_v41  ;;  %v1266_v51 = vpack.c.bf16 %v940_v47, %v939_v45  ;;  %v1306_v52 = vpack.c.bf16 %v956_v48, %v955_v46 }
 0x11a   :  { %v1391_v53 = vpop.f32.mrf.mxu0  ;;  %v1439_v54 = vpop.f32.mrf.mxu1  ;;  %v909_v55 = vadd.f32 %v1823_v44, %v870_v42  ;;  %v925_v56 = vadd.f32 %v1823_v44, %v886_v43 }
 0x11b   :  { %v871_v29 = vmul.f32 %v1390_v24, %v1814_v30  ;;  %v887_v57 = vmul.f32 %v1438_v50, %v846_v49  ;;  %1322 = vst [vmem:[%s1922_s4 + $0x28] sm:$0xff] %v1266_v51   ;;  %1330 = vst [vmem:[%s1922_s4 + $0x68] sm:$0xff] %v1306_v52   ;;  %v851_v30 = vpop.permute.xlu0 %850 }
 0x11c   :  { %v1392_v58 = vpop.f32.mrf.mxu0  ;;  %v1440_v21 = vpop.f32.mrf.mxu1  ;;  %v941_v0 = vmax.f32 %v909_v55, 0.0  ;;  %v957_v1 = vmax.f32 %v925_v56, 0.0 }
 0x11d   :  { %v910_v25 = vadd.f32 %v1823_v44, %v871_v29  ;;  %v926_v59 = vadd.f32 %v1823_v44, %v887_v57  ;;  %v1393_v60 = vadd.f32 %v1392_v58, %v1391_v53  ;;  %v1441_v61 = vadd.f32 %v1440_v21, %v1439_v54 }
 0x11e   :  { %v1394_v62 = vpop.f32.mrf.mxu0  ;;  %v1442_v63 = vpop.f32.mrf.mxu1 }
 0x11f   :  { %v942_v2 = vmax.f32 %v910_v25, 0.0  ;;  %v958_v3 = vmax.f32 %v926_v59, 0.0  ;;  %v872_v26 = vmul.f32 %v1393_v60, %v1816_v31  ;;  %v888_v22 = vmul.f32 %v1441_v61, %v851_v30 }
 0x120   :  { %v1395_v4 = vpop.f32.mrf.mxu0  ;;  %v1443_v5 = vpop.f32.mrf.mxu1 }
 0x121   :  { %v1271_v6 = vpack.c.bf16 %v942_v2, %v941_v0  ;;  %v1311_v7 = vpack.c.bf16 %v958_v3, %v957_v1  ;;  %v1396_v8 = vadd.f32 %v1395_v4, %v1394_v62  ;;  %v1444_v9 = vadd.f32 %v1443_v5, %v1442_v63 }
 0x122   :  { %v911_v11 = vadd.f32 %v1823_v44, %v872_v26  ;;  %v927_v31 = vadd.f32 %v1823_v44, %v888_v22 }
 0x123   :  { %1323 = vst [vmem:[%s1922_s4 + $0x30] sm:$0xff] %v1271_v6   ;;  %1331 = vst [vmem:[%s1922_s4 + $0x70] sm:$0xff] %v1311_v7   ;;  %v873_v12 = vmul.f32 %v1396_v8, %v1818_v34  ;;  %v889_v13 = vmul.f32 %v1444_v9, %v856_v10 }
 0x124   :  { %v943_v16 = vmax.f32 %v911_v11, 0.0  ;;  %v959_v17 = vmax.f32 %v927_v31, 0.0 }
 0x125   :  { %v912_v14 = vadd.f32 %v1823_v44, %v873_v12  ;;  %v928_v15 = vadd.f32 %v1823_v44, %v889_v13 }
 0x127   :  { %v944_v27 = vmax.f32 %v912_v14, 0.0  ;;  %v960_v18 = vmax.f32 %v928_v15, 0.0 }
 0x129   :  { %v1276_v23 = vpack.c.bf16 %v944_v27, %v943_v16  ;;  %v1316_v19 = vpack.c.bf16 %v960_v18, %v959_v17 }
 0x12b   :  { %1324 = vst [vmem:[%s1922_s4 + $0x38] sm:$0xff] %v1276_v23   ;;  %1332 = vst [vmem:[%s1922_s4 + $0x78] sm:$0xff] %v1316_v19  }

// kernel: _lambda_.5
= control target key start
LH: loop header
LB: loop body
LE: loop exit
PB: predicated region body
PF: predicated region fallthrough
CT: control target
= control target key end

     0   :  { %v1735_v0 = vmov 0   ;;  %s2282_s2 = inlined_call_operand.vmem [shape: f32[256,1], index: 2, kind: input, shape index: {}]   ;;  %s2283_s3 = inlined_call_operand.vmem [shape: f32[256,1], index: 3, kind: input, shape index: {}]   ;;  %s2284_s0 = inlined_call_operand.vmem [shape: bf16[256,256], index: 0, kind: input, shape index: {}]   ;;  %s2285_s1 = inlined_call_operand.vmem [shape: bf16[256,128], index: 1, kind: input, shape index: {}]   ;;  %s2286_s4 = inlined_call_operand.vmem [shape: bf16[128,128], index: 4, kind: input, shape index: {}]   ;;  %s2287_s5 = inlined_call_operand.vmem [shape: f32[1,128], index: 5, kind: input, shape index: {}]   ;;  %s2288_s6 = inlined_call_operand.vmem [shape: f32[256,128], index: 6, kind: output, shape index: {}]  }
   0x1   :  { %1678 = vset.pattern.permute.xlu1 %v1735_v0  ;;  %1677 = vset.pattern.permute.xlu0 %v1735_v0  ;;  %v154_v1 = vld [vmem:[%s2282_s2 + $0xf0] sm:$0xff]  ;;  %v155_v3 = vld [vmem:[%s2282_s2 + $0xf8] sm:$0xff]  ;;  %v152_v5 = vld [vmem:[%s2282_s2 + $0xe0] sm:$0xff] }
   0x2   :  { %v138_v2 = vld [vmem:[%s2282_s2 + $0x70] sm:$0xff]  ;;  %308 = vperm.xlu0 %1677, %v154_v1   ;;  %v139_v4 = vld [vmem:[%s2282_s2 + $0x78] sm:$0xff]  ;;  %v153_v6 = vld [vmem:[%s2282_s2 + $0xe8] sm:$0xff] }
   0x3   :  { %228 = vperm.xlu1 %1678, %v138_v2   ;;  %v137_v7 = vld [vmem:[%s2282_s2 + $0x68] sm:$0xff]  ;;  %v136_v8 = vld [vmem:[%s2282_s2 + $0x60] sm:$0xff]  ;;  %v151_v9 = vld [vmem:[%s2282_s2 + $0xd8] sm:$0xff] }
   0x4   :  { %v150_v10 = vld [vmem:[%s2282_s2 + $0xd0] sm:$0xff]  ;;  %v135_v11 = vld [vmem:[%s2282_s2 + $0x58] sm:$0xff]  ;;  %v149_v13 = vld [vmem:[%s2282_s2 + $0xc8] sm:$0xff] }
   0x5   :  { %v134_v12 = vld [vmem:[%s2282_s2 + $0x50] sm:$0xff]  ;;  %v148_v14 = vld [vmem:[%s2282_s2 + $0xc0] sm:$0xff]  ;;  %v133_v15 = vld [vmem:[%s2282_s2 + $0x48] sm:$0xff] }
   0x6   :  { %313 = vperm.xlu0 %1677, %v155_v3   ;;  %v132_v16 = vld [vmem:[%s2282_s2 + $0x40] sm:$0xff]  ;;  %v147_v17 = vld [vmem:[%s2282_s2 + $0xb8] sm:$0xff]  ;;  %v146_v18 = vld [vmem:[%s2282_s2 + $0xb0] sm:$0xff] }
   0x7   :  { %233 = vperm.xlu1 %1678, %v139_v4   ;;  %v131_v19 = vld [vmem:[%s2282_s2 + $0x38] sm:$0xff]  ;;  %v130_v20 = vld [vmem:[%s2282_s2 + $0x30] sm:$0xff]  ;;  %v145_v21 = vld [vmem:[%s2282_s2 + $0xa8] sm:$0xff] }
   0x8   :  { %v144_v22 = vld [vmem:[%s2282_s2 + $0xa0] sm:$0xff]  ;;  %v129_v23 = vld [vmem:[%s2282_s2 + $0x28] sm:$0xff]  ;;  %v143_v25 = vld [vmem:[%s2282_s2 + $0x98] sm:$0xff] }
   0x9   :  { %v128_v24 = vld [vmem:[%s2282_s2 + $0x20] sm:$0xff]  ;;  %v142_v26 = vld [vmem:[%s2282_s2 + $0x90] sm:$0xff]  ;;  %v127_v27 = vld [vmem:[%s2282_s2 + $0x18] sm:$0xff] }
   0xa   :  { %298 = vperm.xlu0 %1677, %v152_v5   ;;  %v126_v28 = vld [vmem:[%s2282_s2 + $0x10] sm:$0xff]  ;;  %v141_v29 = vld [vmem:[%s2282_s2 + $0x88] sm:$0xff]  ;;  %v140_v30 = vld [vmem:[%s2282_s2 + $0x80] sm:$0xff] }
   0xb   :  { %303 = vperm.xlu1 %1678, %v153_v6   ;;  %v125_v31 = vld [vmem:[%s2282_s2 + $0x8] sm:$0xff]  ;;  %v124_v32 = vld [vmem:[%s2282_s2] sm:$0xff]  ;;  %v851_v37 = vld [vmem:[%s2283_s3 + $0x18] sm:$0xff] }
   0xc   :  { %v849_v33 = vld [vmem:[%s2283_s3 + $0x8] sm:$0xff]  ;;  %v848_v34 = vld [vmem:[%s2283_s3] sm:$0xff]  ;;  %v850_v38 = vld [vmem:[%s2283_s3 + $0x10] sm:$0xff] }
   0xd   :  { %v1681_v35 = vld [vmem:[%s2284_s0 + $0x4] ss:$8 sps:$4 sm:$0xff]   ;;  %v855_v41 = vld [vmem:[%s2283_s3 + $0x38] sm:$0xff]  ;;  %v854_v42 = vld [vmem:[%s2283_s3 + $0x30] sm:$0xff] }
   0xe   :  { %218 = vperm.xlu0 %1677, %v136_v8   ;;  %v1684_v36 = vld [vmem:[%s2284_s0 + $0xc4] ss:$8 sps:$4 sm:$0xff]   ;;  %620 = vmatprep.mubr.bf16.mxu0 %v1681_v35  ;;  %v859_v45 = vld [vmem:[%s2283_s3 + $0x58] sm:$0xff]  ;;  %v858_v46 = vld [vmem:[%s2283_s3 + $0x50] sm:$0xff] }
   0xf   :  { %223 = vperm.xlu1 %1678, %v137_v7   ;;  %716 = vmatprep.mubr.bf16.mxu1 %v1684_v36  ;;  %v853_v39 = vld [vmem:[%s2283_s3 + $0x28] sm:$0xff]  ;;  %v852_v40 = vld [vmem:[%s2283_s3 + $0x20] sm:$0xff]  ;;  %v863_v49 = vld [vmem:[%s2283_s3 + $0x78] sm:$0xff] }
  0x10   :  { %v857_v43 = vld [vmem:[%s2283_s3 + $0x48] sm:$0xff]  ;;  %v856_v44 = vld [vmem:[%s2283_s3 + $0x40] sm:$0xff]  ;;  %v862_v50 = vld [vmem:[%s2283_s3 + $0x70] sm:$0xff] }
  0x11   :  { %v861_v47 = vld [vmem:[%s2283_s3 + $0x68] sm:$0xff]  ;;  %v860_v48 = vld [vmem:[%s2283_s3 + $0x60] sm:$0xff]  ;;  %v867_v53 = vld [vmem:[%s2283_s3 + $0x98] sm:$0xff] }
  0x12   :  { %288 = vperm.xlu0 %1677, %v150_v10   ;;  %v865_v51 = vld [vmem:[%s2283_s3 + $0x88] sm:$0xff]  ;;  %v864_v52 = vld [vmem:[%s2283_s3 + $0x80] sm:$0xff]  ;;  %v866_v54 = vld [vmem:[%s2283_s3 + $0x90] sm:$0xff] }
  0x13   :  { %293 = vperm.xlu1 %1678, %v151_v9   ;;  %v869_v55 = vld [vmem:[%s2283_s3 + $0xa8] sm:$0xff]  ;;  %v868_v56 = vld [vmem:[%s2283_s3 + $0xa0] sm:$0xff]  ;;  %v871_v57 = vld [vmem:[%s2283_s3 + $0xb8] sm:$0xff] }
  0x14   :  { %v870_v58 = vld [vmem:[%s2283_s3 + $0xb0] sm:$0xff]  ;;  %v873_v59 = vld [vmem:[%s2283_s3 + $0xc8] sm:$0xff]  ;;  %v872_v60 = vld [vmem:[%s2283_s3 + $0xc0] sm:$0xff] }
  0x15   :  { %v875_v61 = vld [vmem:[%s2283_s3 + $0xd8] sm:$0xff]  ;;  %v874_v62 = vld [vmem:[%s2283_s3 + $0xd0] sm:$0xff]  ;;  %v877_v63 = vld [vmem:[%s2283_s3 + $0xe8] sm:$0xff] }
  0x16   :  { %208 = vperm.xlu0 %1677, %v134_v12   ;;  %v876_v0 = vld [vmem:[%s2283_s3 + $0xe0] sm:$0xff]  ;;  %v1475_v1 = vld [vmem:[%s2285_s1 + $0x78] sm:$0xff]   ;;  %v878_v4 = vld [vmem:[%s2283_s3 + $0xf0] sm:$0xff] }
  0x17   :  { %213 = vperm.xlu1 %1678, %v135_v11   ;;  %v1467_v2 = vld [vmem:[%s2285_s1 + $0x38] sm:$0xff]   ;;  %v1459_v7 = vunpack.c.l.bf16 %v1475_v1  ;;  %v1460_v9 = vunpack.c.h.bf16 %v1475_v1  ;;  %v1474_v11 = vld [vmem:[%s2285_s1 + $0x70] sm:$0xff]  }
  0x18   :  { %v879_v3 = vld [vmem:[%s2283_s3 + $0xf8] sm:$0xff]  ;;  %v1427_v8 = vunpack.c.l.bf16 %v1467_v2  ;;  %v1428_v10 = vunpack.c.h.bf16 %v1467_v2 }
  0x1a   :  { %278 = vperm.xlu0 %1677, %v148_v14   ;;  %v1455_v14 = vunpack.c.l.bf16 %v1474_v11 }
  0x1b   :  { %283 = vperm.xlu1 %1678, %v149_v13  }
  0x1e   :  { %198 = vperm.xlu0 %1677, %v132_v16  }
  0x1f   :  { %203 = vperm.xlu1 %1678, %v133_v15   ;;  %v1456_v15 = vunpack.c.h.bf16 %v1474_v11 }
  0x22   :  { %268 = vperm.xlu0 %1677, %v146_v18  }
  0x23   :  { %273 = vperm.xlu1 %1678, %v147_v17  }
  0x26   :  { %188 = vperm.xlu0 %1677, %v130_v20   ;;  %v1466_v20 = vld [vmem:[%s2285_s1 + $0x30] sm:$0xff]  }
  0x27   :  { %193 = vperm.xlu1 %1678, %v131_v19  }
  0x2a   :  { %258 = vperm.xlu0 %1677, %v144_v22  }
  0x2b   :  { %263 = vperm.xlu1 %1678, %v145_v21  }
  0x2e   :  { %178 = vperm.xlu0 %1677, %v128_v24  }
  0x2f   :  { %183 = vperm.xlu1 %1678, %v129_v23  }
  0x32   :  { %248 = vperm.xlu0 %1677, %v142_v26  }
  0x33   :  { %253 = vperm.xlu1 %1678, %v143_v25  }
  0x36   :  { %168 = vperm.xlu0 %1677, %v126_v28   ;;  %v1423_v28 = vunpack.c.l.bf16 %v1466_v20 }
  0x37   :  { %173 = vperm.xlu1 %1678, %v127_v27   ;;  %v1424_v27 = vunpack.c.h.bf16 %v1466_v20 }
  0x3a   :  { %238 = vperm.xlu0 %1677, %v140_v30  }
  0x3b   :  { %243 = vperm.xlu1 %1678, %v141_v29   ;;  %v1473_v29 = vld [vmem:[%s2285_s1 + $0x68] sm:$0xff]  }
  0x3c   :  { %v1452_v35 = vunpack.c.h.bf16 %v1473_v29  ;;  %v1451_v36 = vunpack.c.l.bf16 %v1473_v29  ;;  %v1469_v29 = vld [vmem:[%s2285_s1 + $0x48] sm:$0xff]  }
  0x3e   :  { %158 = vperm.xlu0 %1677, %v124_v32  }
  0x3f   :  { %163 = vperm.xlu1 %1678, %v125_v31  }
  0x42   :  { %882 = vperm.xlu0 %1677, %v848_v34  }
  0x43   :  { %887 = vperm.xlu1 %1678, %v849_v33  }
  0x46   :  { %892 = vperm.xlu0 %1677, %v850_v38  }
  0x47   :  { %897 = vperm.xlu1 %1678, %v851_v37   ;;  %v1465_v37 = vld [vmem:[%s2285_s1 + $0x28] sm:$0xff]  }
  0x4a   :  { %902 = vperm.xlu0 %1677, %v852_v40  }
  0x4b   :  { %907 = vperm.xlu1 %1678, %v853_v39  }
  0x4e   :  { %912 = vperm.xlu0 %1677, %v854_v42  }
  0x4f   :  { %917 = vperm.xlu1 %1678, %v855_v41  }
  0x52   :  { %922 = vperm.xlu0 %1677, %v856_v44   ;;  %v1419_v44 = vunpack.c.l.bf16 %v1465_v37 }
  0x53   :  { %927 = vperm.xlu1 %1678, %v857_v43   ;;  %v1420_v43 = vunpack.c.h.bf16 %v1465_v37  ;;  %v1461_v37 = vld [vmem:[%s2285_s1 + $0x8] sm:$0xff]  }
  0x56   :  { %932 = vperm.xlu0 %1677, %v858_v46  }
  0x57   :  { %937 = vperm.xlu1 %1678, %v859_v45   ;;  %v1472_v45 = vld [vmem:[%s2285_s1 + $0x60] sm:$0xff]  }
  0x5a   :  { %942 = vperm.xlu0 %1677, %v860_v48  }
  0x5b   :  { %947 = vperm.xlu1 %1678, %v861_v47  }
  0x5e   :  { %952 = vperm.xlu0 %1677, %v862_v50  }
  0x5f   :  { %957 = vperm.xlu1 %1678, %v863_v49  }
  0x62   :  { %962 = vperm.xlu0 %1677, %v864_v52   ;;  %v1447_v52 = vunpack.c.l.bf16 %v1472_v45 }
  0x63   :  { %967 = vperm.xlu1 %1678, %v865_v51   ;;  %v1448_v51 = vunpack.c.h.bf16 %v1472_v45  ;;  %v1468_v45 = vld [vmem:[%s2285_s1 + $0x40] sm:$0xff]  }
  0x66   :  { %972 = vperm.xlu0 %1677, %v866_v54  }
  0x67   :  { %977 = vperm.xlu1 %1678, %v867_v53   ;;  %v1464_v53 = vld [vmem:[%s2285_s1 + $0x20] sm:$0xff]  }
  0x6a   :  { %982 = vperm.xlu0 %1677, %v868_v56  }
  0x6b   :  { %987 = vperm.xlu1 %1678, %v869_v55  }
  0x6e   :  { %992 = vperm.xlu0 %1677, %v870_v58  }
  0x6f   :  { %997 = vperm.xlu1 %1678, %v871_v57  }
  0x72   :  { %1002 = vperm.xlu0 %1677, %v872_v60   ;;  %v1415_v60 = vunpack.c.l.bf16 %v1464_v53 }
  0x73   :  { %1007 = vperm.xlu1 %1678, %v873_v59   ;;  %v1416_v59 = vunpack.c.h.bf16 %v1464_v53  ;;  %v1398_v53 = vld [vmem:[%s2285_s1] sm:$0xff]  }
  0x76   :  { %1012 = vperm.xlu0 %1677, %v874_v62  }
  0x77   :  { %1017 = vperm.xlu1 %1678, %v875_v61   ;;  %v1471_v61 = vld [vmem:[%s2285_s1 + $0x58] sm:$0xff]  }
  0x7a   :  { %1022 = vperm.xlu0 %1677, %v876_v0  }
  0x7b   :  { %1027 = vperm.xlu1 %1678, %v877_v63  }
  0x7d   :  { %v309_v5 = vpop.permute.xlu0 %308 }
  0x7e   :  { %v229_v6 = vpop.permute.xlu1 %228  ;;  %1032 = vperm.xlu0 %1677, %v878_v4   ;;  %v346_v16 = vmul.f32 %v1459_v7, %v309_v5  ;;  %v1443_v4 = vunpack.c.l.bf16 %v1471_v61  ;;  %v1463_v5 = vld [vmem:[%s2285_s1 + $0x18] sm:$0xff]  }
  0x7f   :  { %1037 = vperm.xlu1 %1678, %v879_v3   ;;  %v330_v17 = vmul.f32 %v1427_v8, %v229_v6  ;;  %v1444_v3 = vunpack.c.h.bf16 %v1471_v61 }
  0x81   :  { %v314_v12 = vpop.permute.xlu0 %313 }
  0x82   :  { %v234_v13 = vpop.permute.xlu1 %233  ;;  %v347_v18 = vmul.f32 %v1460_v9, %v314_v12  ;;  %v1470_v9 = vld [vmem:[%s2285_s1 + $0x50] sm:$0xff]   ;;  %v1412_v12 = vunpack.c.h.bf16 %v1463_v5 }
  0x83   :  { %v331_v19 = vmul.f32 %v1428_v10, %v234_v13  ;;  %v1411_v13 = vunpack.c.l.bf16 %v1463_v5  ;;  %v1439_v20 = vunpack.c.l.bf16 %v1470_v9  ;;  %v1682_v5 = vld [vmem:[%s2284_s0 + $0xc0] ss:$8 sps:$4 sm:$0xff]  }
  0x84   :  { %v363_v21 = vpack.c.bf16 %v347_v18, %v346_v16 }
  0x85   :  { %v355_v22 = vpack.c.bf16 %v331_v19, %v330_v17  ;;  %v299_v23 = vpop.permute.xlu0 %298  ;;  %v1440_v19 = vunpack.c.h.bf16 %v1470_v9  ;;  %v1729_v9 = vld [vmem:[%s2286_s4 + $0x28] sm:$0xff]  }
  0x86   :  { %v304_v24 = vpop.permute.xlu1 %303  ;;  %v344_v25 = vmul.f32 %v1455_v14, %v299_v23  ;;  %1476 = vmatprep.subr.bf16.mxu0 %v363_v21  ;;  %1660 = vmatprep.subr.bf16.mxu1 %v363_v21  ;;  %v1462_v21 = vld [vmem:[%s2285_s1 + $0x10] sm:$0xff]  }
  0x87   :  { %v345_v26 = vmul.f32 %v1456_v15, %v304_v24  ;;  %1477 = vmatpush3.bf16.msra.mxu0 %v355_v22  ;;  %1668 = vmatpush3.bf16.msra.mxu1 %v355_v22 }
  0x89   :  { %v362_v30 = vpack.c.bf16 %v345_v26, %v344_v25  ;;  %v219_v32 = vpop.permute.xlu0 %218 }
  0x8a   :  { %v224_v31 = vpop.permute.xlu1 %223  ;;  %v328_v34 = vmul.f32 %v1423_v28, %v219_v32  ;;  %v1407_v28 = vunpack.c.l.bf16 %v1462_v21 }
  0x8b   :  { %v329_v33 = vmul.f32 %v1424_v27, %v224_v31  ;;  %1478 = vmatprep.subr.bf16.mxu0 %v362_v30  ;;  %1661 = vmatprep.subr.bf16.mxu1 %v362_v30  ;;  %v1408_v27 = vunpack.c.h.bf16 %v1462_v21  ;;  %v1705_v21 = vld [vmem:[%s2284_s0 + $0x40] ss:$8 sps:$4 sm:$0xff]  }
  0x8d   :  { %v354_v38 = vpack.c.bf16 %v329_v33, %v328_v34  ;;  %v289_v40 = vpop.permute.xlu0 %288 }
  0x8e   :  { %v294_v39 = vpop.permute.xlu1 %293  ;;  %v342_v42 = vmul.f32 %v1451_v36, %v289_v40  ;;  %v1435_v36 = vunpack.c.l.bf16 %v1469_v29 }
  0x8f   :  { %v343_v41 = vmul.f32 %v1452_v35, %v294_v39  ;;  %1479 = vmatpush3.bf16.msra.mxu0 %v354_v38  ;;  %1669 = vmatpush3.bf16.msra.mxu1 %v354_v38  ;;  %v1436_v35 = vunpack.c.h.bf16 %v1469_v29  ;;  %v1717_v29 = vld [vmem:[%s2284_s0 + $0x80] ss:$8 sps:$4 sm:$0xff]  }
  0x91   :  { %v361_v46 = vpack.c.bf16 %v343_v41, %v342_v42  ;;  %v209_v48 = vpop.permute.xlu0 %208 }
  0x92   :  { %v214_v47 = vpop.permute.xlu1 %213  ;;  %v326_v50 = vmul.f32 %v1419_v44, %v209_v48  ;;  %v1403_v44 = vunpack.c.l.bf16 %v1461_v37 }
  0x93   :  { %v327_v49 = vmul.f32 %v1420_v43, %v214_v47  ;;  %1480 = vmatprep.subr.bf16.mxu0 %v361_v46  ;;  %1662 = vmatprep.subr.bf16.mxu1 %v361_v46  ;;  %v1404_v43 = vunpack.c.h.bf16 %v1461_v37  ;;  %v1723_v37 = vld [vmem:[%s2284_s0 + $0xa0] ss:$8 sps:$4 sm:$0xff]  }
  0x95   :  { %v353_v54 = vpack.c.bf16 %v327_v49, %v326_v50  ;;  %v279_v56 = vpop.permute.xlu0 %278 }
  0x96   :  { %v284_v55 = vpop.permute.xlu1 %283  ;;  %v340_v58 = vmul.f32 %v1447_v52, %v279_v56  ;;  %v1431_v52 = vunpack.c.l.bf16 %v1468_v45 }
  0x97   :  { %v341_v57 = vmul.f32 %v1448_v51, %v284_v55  ;;  %1481 = vmatpush3.bf16.msra.mxu0 %v353_v54  ;;  %1670 = vmatpush3.bf16.msra.mxu1 %v353_v54  ;;  %v1432_v51 = vunpack.c.h.bf16 %v1468_v45 }
  0x99   :  { %v360_v62 = vpack.c.bf16 %v341_v57, %v340_v58  ;;  %v199_v0 = vpop.permute.xlu0 %198 }
  0x9a   :  { %v204_v63 = vpop.permute.xlu1 %203  ;;  %v324_v2 = vmul.f32 %v1415_v60, %v199_v0  ;;  %v1399_v60 = vunpack.c.l.bf16 %v1398_v53 }
  0x9b   :  { %v325_v1 = vmul.f32 %v1416_v59, %v204_v63  ;;  %1482 = vmatprep.subr.bf16.mxu0 %v360_v62  ;;  %1663 = vmatprep.subr.bf16.mxu1 %v360_v62  ;;  %v1400_v59 = vunpack.c.h.bf16 %v1398_v53 }
  0x9d   :  { %v352_v6 = vpack.c.bf16 %v325_v1, %v324_v2  ;;  %v269_v8 = vpop.permute.xlu0 %268  ;;  %v1727_v2 = vld [vmem:[%s2286_s4 + $0x38] sm:$0xff]  }
  0x9e   :  { %v274_v7 = vpop.permute.xlu1 %273  ;;  %v338_v11 = vmul.f32 %v1443_v4, %v269_v8  ;;  %v1679_v4 = vld [vmem:[%s2284_s0] ss:$8 sps:$4 sm:$0xff]   ;;  %v1728_v8 = vld [vmem:[%s2286_s4 + $0x30] sm:$0xff]  }
  0x9f   :  { %v339_v10 = vmul.f32 %v1444_v3, %v274_v7  ;;  %1483 = vmatpush3.bf16.msra.mxu0 %v352_v6  ;;  %1671 = vmatpush3.bf16.msra.mxu1 %v352_v6  ;;  %v1685_v6 = vld [vmem:[%s2284_s0 + $0x14] ss:$8 sps:$4 sm:$0xff]  }
  0xa0   :  { %v1687_v7 = vld [vmem:[%s2284_s0 + $0xd4] ss:$8 sps:$4 sm:$0xff]  }
  0xa1   :  { %v359_v14 = vpack.c.bf16 %v339_v10, %v338_v11  ;;  %v189_v16 = vpop.permute.xlu0 %188  ;;  %v1689_v10 = vld [vmem:[%s2284_s0 + $0x10] ss:$8 sps:$4 sm:$0xff]  }
  0xa2   :  { %v194_v15 = vpop.permute.xlu1 %193  ;;  %v322_v18 = vmul.f32 %v1411_v13, %v189_v16  ;;  %v1690_v11 = vld [vmem:[%s2284_s0 + $0xd0] ss:$8 sps:$4 sm:$0xff]   ;;  %v1693_v13 = vld [vmem:[%s2284_s0 + $0xe4] ss:$8 sps:$4 sm:$0xff]   ;;  %v1697_v16 = vld [vmem:[%s2284_s0 + $0x34] ss:$8 sps:$4 sm:$0xff]  }
  0xa3   :  { %v323_v17 = vmul.f32 %v1412_v12, %v194_v15  ;;  %1484 = vmatprep.subr.bf16.mxu0 %v359_v14  ;;  %1664 = vmatprep.subr.bf16.mxu1 %v359_v14  ;;  %v1691_v12 = vld [vmem:[%s2284_s0 + $0x24] ss:$8 sps:$4 sm:$0xff]   ;;  %v1695_v14 = vld [vmem:[%s2284_s0 + $0x20] ss:$8 sps:$4 sm:$0xff]  }
  0xa4   :  { %v1696_v15 = vld [vmem:[%s2284_s0 + $0xe0] ss:$8 sps:$4 sm:$0xff]  }
  0xa5   :  { %v351_v22 = vpack.c.bf16 %v323_v17, %v322_v18  ;;  %v259_v24 = vpop.permute.xlu0 %258  ;;  %v1699_v17 = vld [vmem:[%s2284_s0 + $0xf4] ss:$8 sps:$4 sm:$0xff]   ;;  %v1701_v18 = vld [vmem:[%s2284_s0 + $0x30] ss:$8 sps:$4 sm:$0xff]  }
  0xa6   :  { %v264_v23 = vpop.permute.xlu1 %263  ;;  %v336_v26 = vmul.f32 %v1439_v20, %v259_v24  ;;  %v1703_v20 = vld [vmem:[%s2284_s0 + $0x44] ss:$8 sps:$4 sm:$0xff]  }
  0xa7   :  { %v337_v25 = vmul.f32 %v1440_v19, %v264_v23  ;;  %1485 = vmatpush3.bf16.msra.mxu0 %v351_v22  ;;  %1672 = vmatpush3.bf16.msra.mxu1 %v351_v22  ;;  %v1702_v19 = vld [vmem:[%s2284_s0 + $0xf0] ss:$8 sps:$4 sm:$0xff]   ;;  %v1706_v22 = vld [vmem:[%s2284_s0 + $0x54] ss:$8 sps:$4 sm:$0xff]   ;;  %v1709_v24 = vld [vmem:[%s2284_s0 + $0x64] ss:$8 sps:$4 sm:$0xff]  }
  0xa8   :  { %v1708_v23 = vld [vmem:[%s2284_s0 + $0x50] ss:$8 sps:$4 sm:$0xff]  }
  0xa9   :  { %v358_v30 = vpack.c.bf16 %v337_v25, %v336_v26  ;;  %v179_v32 = vpop.permute.xlu0 %178  ;;  %v1711_v25 = vld [vmem:[%s2284_s0 + $0x60] ss:$8 sps:$4 sm:$0xff]   ;;  %v1712_v26 = vld [vmem:[%s2284_s0 + $0x74] ss:$8 sps:$4 sm:$0xff]  }
  0xaa   :  { %v184_v31 = vpop.permute.xlu1 %183  ;;  %v320_v34 = vmul.f32 %v1407_v28, %v179_v32  ;;  %v1715_v28 = vld [vmem:[%s2284_s0 + $0x84] ss:$8 sps:$4 sm:$0xff]   ;;  %v1731_v32 = vld [vmem:[%s2286_s4 + $0x18] sm:$0xff]  }
  0xab   :  { %v321_v33 = vmul.f32 %v1408_v27, %v184_v31  ;;  %1486 = vmatprep.subr.bf16.mxu0 %v358_v30  ;;  %1665 = vmatprep.subr.bf16.mxu1 %v358_v30  ;;  %v1714_v27 = vld [vmem:[%s2284_s0 + $0x70] ss:$8 sps:$4 sm:$0xff]   ;;  %v1718_v30 = vld [vmem:[%s2284_s0 + $0x94] ss:$8 sps:$4 sm:$0xff]   ;;  %v1730_v31 = vld [vmem:[%s2286_s4 + $0x20] sm:$0xff]  }
  0xad   :  { %v350_v38 = vpack.c.bf16 %v321_v33, %v320_v34  ;;  %v249_v40 = vpop.permute.xlu0 %248  ;;  %v1720_v33 = vld [vmem:[%s2284_s0 + $0x90] ss:$8 sps:$4 sm:$0xff]   ;;  %v1721_v34 = vld [vmem:[%s2284_s0 + $0xa4] ss:$8 sps:$4 sm:$0xff]  }
  0xae   :  { %v254_v39 = vpop.permute.xlu1 %253  ;;  %v334_v42 = vmul.f32 %v1435_v36, %v249_v40  ;;  %v1733_v36 = vld [vmem:[%s2286_s4 + $0x8] sm:$0xff]   ;;  %v1726_v40 = vld [vmem:[%s2284_s0 + $0xb0] ss:$8 sps:$4 sm:$0xff]  }
  0xaf   :  { %v335_v41 = vmul.f32 %v1436_v35, %v254_v39  ;;  %1487 = vmatpush3.bf16.msra.mxu0 %v350_v38  ;;  %1673 = vmatpush3.bf16.msra.mxu1 %v350_v38  ;;  %v1732_v35 = vld [vmem:[%s2286_s4 + $0x10] sm:$0xff]   ;;  %v1734_v39 = vld [vmem:[%s2286_s4] sm:$0xff]  }
  0xb0   :  { %v1724_v38 = vld [vmem:[%s2284_s0 + $0xb4] ss:$8 sps:$4 sm:$0xff]  }
  0xb1   :  { %v357_v46 = vpack.c.bf16 %v335_v41, %v334_v42  ;;  %v169_v48 = vpop.permute.xlu0 %168 }
  0xb2   :  { %v174_v47 = vpop.permute.xlu1 %173  ;;  %v318_v50 = vmul.f32 %v1403_v44, %v169_v48 }
  0xb3   :  { %v319_v49 = vmul.f32 %v1404_v43, %v174_v47  ;;  %1488 = vmatprep.subr.bf16.mxu0 %v357_v46  ;;  %1666 = vmatprep.subr.bf16.mxu1 %v357_v46 }
  0xb5   :  { %v349_v54 = vpack.c.bf16 %v319_v49, %v318_v50  ;;  %v239_v56 = vpop.permute.xlu0 %238 }
  0xb6   :  { %v244_v55 = vpop.permute.xlu1 %243  ;;  %v332_v58 = vmul.f32 %v1431_v52, %v239_v56 }
  0xb7   :  { %v333_v57 = vmul.f32 %v1432_v51, %v244_v55  ;;  %1489 = vmatpush3.bf16.msra.mxu0 %v349_v54  ;;  %1674 = vmatpush3.bf16.msra.mxu1 %v349_v54 }
  0xb9   :  { %v356_v61 = vpack.c.bf16 %v333_v57, %v332_v58  ;;  %v159_v63 = vpop.permute.xlu0 %158 }
  0xba   :  { %v164_v62 = vpop.permute.xlu1 %163  ;;  %v316_v1 = vmul.f32 %v1399_v60, %v159_v63 }
  0xbb   :  { %v317_v0 = vmul.f32 %v1400_v59, %v164_v62  ;;  %1490 = vmatprep.subr.bf16.mxu0 %v356_v61  ;;  %1667 = vmatprep.subr.bf16.mxu1 %v356_v61 }
  0xbd   :  { %v348_v3 = vpack.c.bf16 %v317_v0, %v316_v1  ;;  %v883_v48 = vpop.permute.xlu0 %882 }
  0xbe   :  { %v888_v46 = vpop.permute.xlu1 %887 }
  0xbf   :  { %1491 = vmatpush3.bf16.msra.mxu0 %v348_v3  ;;  %1675 = vmatpush3.bf16.msra.mxu1 %v348_v3 }
  0xc0   :  { %1612 = vmatprep.subr.bf16.mxu1 %v1727_v2 }
  0xc1   :  { %v893_v59 = vpop.permute.xlu0 %892 }
  0xc2   :  { %621 = vmatmul.mubr.bf16.vlgmr.msra.gmra.mxu0 %v1679_v4  ;;  %717 = vmatmul.mubr.bf16.vlgmr.msra.gmra.mxu1 %v1682_v5  ;;  %v898_v57 = vpop.permute.xlu1 %897 }
  0xc3   :  { %628 = vmatprep.mubr.bf16.mxu0 %v1685_v6  ;;  %724 = vmatprep.mubr.bf16.mxu1 %v1687_v7 }
  0xc4   :  { %1613 = vmatpush3.bf16.msra.mxu1 %v1727_v2 }
  0xc5   :  { %1614 = vmatprep.subr.bf16.mxu1 %v1728_v8  ;;  %v903_v6 = vpop.permute.xlu0 %902 }
  0xc6   :  { %v908_v4 = vpop.permute.xlu1 %907 }
  0xc8   :  { %1615 = vmatpush3.bf16.msra.mxu1 %v1728_v8 }
  0xc9   :  { %1616 = vmatprep.subr.bf16.mxu1 %v1729_v9 }
  0xca   :  { %629 = vmatmul.mubr.bf16.gmra.mxu0 %v1689_v10  ;;  %725 = vmatmul.mubr.bf16.gmra.mxu1 %v1690_v11 }
  0xcb   :  { %636 = vmatprep.mubr.bf16.mxu0 %v1691_v12  ;;  %732 = vmatprep.mubr.bf16.mxu1 %v1693_v13 }
  0xcc   :  { %1617 = vmatpush3.bf16.msra.mxu1 %v1729_v9 }
  0xcd   :  { %1618 = vmatprep.subr.bf16.mxu1 %v1730_v31 }
  0xd0   :  { %1619 = vmatpush3.bf16.msra.mxu1 %v1730_v31 }
  0xd1   :  { %1620 = vmatprep.subr.bf16.mxu1 %v1731_v32 }
  0xd2   :  { %637 = vmatmul.mubr.bf16.gmra.mxu0 %v1695_v14  ;;  %733 = vmatmul.mubr.bf16.gmra.mxu1 %v1696_v15  ;;  %v918_v15 = vpop.permute.xlu1 %917 }
  0xd3   :  { %644 = vmatprep.mubr.bf16.mxu0 %v1697_v16  ;;  %740 = vmatprep.mubr.bf16.mxu1 %v1699_v17  ;;  %v913_v17 = vpop.permute.xlu0 %912 }
  0xd4   :  { %1621 = vmatpush3.bf16.msra.mxu1 %v1731_v32 }
  0xd5   :  { %1622 = vmatprep.subr.bf16.mxu1 %v1732_v35 }
  0xd8   :  { %1623 = vmatpush3.bf16.msra.mxu1 %v1732_v35 }
  0xd9   :  { %1624 = vmatprep.subr.bf16.mxu1 %v1733_v36 }
  0xda   :  { %645 = vmatmul.mubr.bf16.gmra.mxu0 %v1701_v18  ;;  %741 = vmatmul.mubr.bf16.gmra.mxu1 %v1702_v19 }
  0xdb   :  { %652 = vmatprep.mubr.bf16.mxu0 %v1703_v20 }
  0xdc   :  { %1625 = vmatpush3.bf16.msra.mxu1 %v1733_v36 }
  0xdd   :  { %1626 = vmatprep.subr.bf16.mxu1 %v1734_v39 }
  0xe0   :  { %1627 = vmatpush3.bf16.msra.mxu1 %v1734_v39 }
  0xe2   :  { %653 = vmatmul.mubr.bf16.gmra.mxu0 %v1705_v21 }
  0xe3   :  { %660 = vmatprep.mubr.bf16.mxu0 %v1706_v22 }
  0xea   :  { %661 = vmatmul.mubr.bf16.gmra.mxu0 %v1708_v23 }
  0xeb   :  { %668 = vmatprep.mubr.bf16.mxu0 %v1709_v24 }
  0xf2   :  { %669 = vmatmul.mubr.bf16.gmra.mxu0 %v1711_v25 }
  0xf3   :  { %676 = vmatprep.mubr.bf16.mxu0 %v1712_v26  ;;  %v928_v26 = vpop.permute.xlu1 %927 }
  0xfa   :  { %677 = vmatmul.mubr.bf16.gmra.mxu0 %v1714_v27 }
  0xfb   :  { %684 = vmatprep.mubr.bf16.mxu0 %v1715_v28  ;;  %v923_v28 = vpop.permute.xlu0 %922 }
  0xff   :  { %v933_v39 = vpop.permute.xlu0 %932 }
 0x102   :  { %685 = vmatmul.mubr.bf16.gmra.mxu0 %v1717_v29 }
 0x103   :  { %692 = vmatprep.mubr.bf16.mxu0 %v1718_v30 }
 0x10a   :  { %693 = vmatmul.mubr.bf16.gmra.mxu0 %v1720_v33 }
 0x10b   :  { %700 = vmatprep.mubr.bf16.mxu0 %v1721_v34 }
 0x112   :  { %701 = vmatmul.mubr.bf16.gmra.mxu0 %v1723_v37 }
 0x113   :  { %708 = vmatprep.mubr.bf16.mxu0 %v1724_v38  ;;  %v938_v38 = vpop.permute.xlu1 %937 }
 0x11a   :  { %709 = vmatmul.mubr.bf16.gmra.mxu0 %v1726_v40 }
 0x182   :  { %v1492_v41 = vpop.f32.mrf.mxu0  ;;  %v2131_v34 = vpop.f32.mrf.mxu1 }
 0x184   :  { %v1493_v42 = vpop.f32.mrf.mxu0 }
 0x185   :  { %v1494_v44 = vadd.f32 %v1493_v42, %v1492_v41  ;;  %v2133_v41 = vpop.f32.mrf.mxu1 }
 0x186   :  { %v1495_v43 = vpop.f32.mrf.mxu0 }
 0x187   :  { %v1040_v50 = vmul.f32 %v1494_v44, %v883_v48 }
 0x188   :  { %v1496_v45 = vpop.f32.mrf.mxu0 }
 0x189   :  { %v1497_v47 = vadd.f32 %v1496_v45, %v1495_v43 }
 0x18a   :  { %v1498_v49 = vpop.f32.mrf.mxu0 }
 0x18b   :  { %v1041_v51 = vmul.f32 %v1497_v47, %v888_v46  ;;  %v2135_v47 = vpop.f32.mrf.mxu1 }
 0x18c   :  { %v1499_v52 = vpop.f32.mrf.mxu0 }
 0x18d   :  { %v1072_v53 = vpack.c.bf16 %v1041_v51, %v1040_v50  ;;  %v1500_v55 = vadd.f32 %v1499_v52, %v1498_v49  ;;  %v948_v51 = vpop.permute.xlu1 %947  ;;  %v943_v52 = vpop.permute.xlu0 %942 }
 0x18e   :  { %v1501_v54 = vpop.f32.mrf.mxu0 }
 0x18f   :  { %1628 = vmatprep.mubr.bf16.mxu1 %v1072_v53  ;;  %v1042_v61 = vmul.f32 %v1500_v55, %v893_v59 }
 0x190   :  { %v1502_v56 = vpop.f32.mrf.mxu0 }
 0x191   :  { %v1503_v58 = vadd.f32 %v1502_v56, %v1501_v54  ;;  %v2137_v54 = vpop.f32.mrf.mxu1 }
 0x192   :  { %v1504_v60 = vpop.f32.mrf.mxu0 }
 0x193   :  { %v1043_v62 = vmul.f32 %v1503_v58, %v898_v57 }
 0x194   :  { %v1505_v63 = vpop.f32.mrf.mxu0 }
 0x195   :  { %v1073_v0 = vpack.c.bf16 %v1043_v62, %v1042_v61  ;;  %v1506_v2 = vadd.f32 %v1505_v63, %v1504_v60  ;;  %v2139_v60 = vpop.f32.mrf.mxu1  ;;  %v958_v62 = vpop.permute.xlu1 %957 }
 0x196   :  { %v1507_v1 = vpop.f32.mrf.mxu0 }
 0x197   :  { %1629 = vmatmul.mubr.bf16.vlgmr.msra.gmra.mxu1 %v1073_v0  ;;  %v1044_v8 = vmul.f32 %v1506_v2, %v903_v6 }
 0x198   :  { %v1508_v3 = vpop.f32.mrf.mxu0 }
 0x199   :  { %v1509_v5 = vadd.f32 %v1508_v3, %v1507_v1  ;;  %v953_v1 = vpop.permute.xlu0 %952  ;;  %v2141_v3 = vpop.f32.mrf.mxu1 }
 0x19a   :  { %v1510_v7 = vpop.f32.mrf.mxu0 }
 0x19b   :  { %v1045_v9 = vmul.f32 %v1509_v5, %v908_v4 }
 0x19c   :  { %v1511_v10 = vpop.f32.mrf.mxu0 }
 0x19d   :  { %v1074_v11 = vpack.c.bf16 %v1045_v9, %v1044_v8  ;;  %v1512_v13 = vadd.f32 %v1511_v10, %v1510_v7  ;;  %v968_v8 = vpop.permute.xlu1 %967  ;;  %v1573_v10 = vpop.f32.mrf.mxu1 }
 0x19e   :  { %v1513_v12 = vpop.f32.mrf.mxu0 }
 0x19f   :  { %1632 = vmatprep.mubr.bf16.mxu1 %v1074_v11  ;;  %v1046_v19 = vmul.f32 %v1512_v13, %v913_v17 }
 0x1a0   :  { %v1514_v14 = vpop.f32.mrf.mxu0 }
 0x1a1   :  { %v1515_v16 = vadd.f32 %v1514_v14, %v1513_v12  ;;  %v963_v12 = vpop.permute.xlu0 %962 }
 0x1a2   :  { %v1516_v18 = vpop.f32.mrf.mxu0 }
 0x1a3   :  { %v1047_v20 = vmul.f32 %v1515_v16, %v918_v15  ;;  %v1574_v16 = vpop.f32.mrf.mxu1 }
 0x1a4   :  { %v1517_v21 = vpop.f32.mrf.mxu0 }
 0x1a5   :  { %v1075_v22 = vpack.c.bf16 %v1047_v20, %v1046_v19  ;;  %v1518_v24 = vadd.f32 %v1517_v21, %v1516_v18  ;;  %v978_v18 = vpop.permute.xlu1 %977 }
 0x1a6   :  { %v1519_v23 = vpop.f32.mrf.mxu0 }
 0x1a7   :  { %1633 = vmatmul.mubr.bf16.gmra.mxu1 %v1075_v22  ;;  %v1048_v30 = vmul.f32 %v1518_v24, %v923_v28  ;;  %v973_v22 = vpop.permute.xlu0 %972  ;;  %v1576_v24 = vpop.f32.mrf.mxu1 }
 0x1a8   :  { %v1520_v25 = vpop.f32.mrf.mxu0 }
 0x1a9   :  { %v1521_v27 = vadd.f32 %v1520_v25, %v1519_v23  ;;  %v988_v28 = vpop.permute.xlu1 %987 }
 0x1aa   :  { %v1522_v29 = vpop.f32.mrf.mxu0 }
 0x1ab   :  { %v1049_v31 = vmul.f32 %v1521_v27, %v928_v26 }
 0x1ac   :  { %v1523_v32 = vpop.f32.mrf.mxu0 }
 0x1ad   :  { %v1076_v33 = vpack.c.bf16 %v1049_v31, %v1048_v30  ;;  %v1524_v36 = vadd.f32 %v1523_v32, %v1522_v29  ;;  %v1577_v30 = vpop.f32.mrf.mxu1  ;;  %v983_v32 = vpop.permute.xlu0 %982 }
 0x1ae   :  { %v1525_v35 = vpop.f32.mrf.mxu0 }
 0x1af   :  { %1636 = vmatprep.mubr.bf16.mxu1 %v1076_v33  ;;  %v1050_v43 = vmul.f32 %v1524_v36, %v933_v39 }
 0x1b0   :  { %v1526_v37 = vpop.f32.mrf.mxu0 }
 0x1b1   :  { %v1527_v40 = vadd.f32 %v1526_v37, %v1525_v35 }
 0x1b2   :  { %v1528_v42 = vpop.f32.mrf.mxu0 }
 0x1b3   :  { %v1051_v44 = vmul.f32 %v1527_v40, %v938_v38  ;;  %v1579_v38 = vpop.f32.mrf.mxu1  ;;  %v998_v40 = vpop.permute.xlu1 %997 }
 0x1b4   :  { %v1529_v45 = vpop.f32.mrf.mxu0 }
 0x1b5   :  { %v1077_v46 = vpack.c.bf16 %v1051_v44, %v1050_v43  ;;  %v1530_v49 = vadd.f32 %v1529_v45, %v1528_v42  ;;  %v993_v44 = vpop.permute.xlu0 %992 }
 0x1b6   :  { %v1531_v48 = vpop.f32.mrf.mxu0 }
 0x1b7   :  { %1637 = vmatmul.mubr.bf16.gmra.mxu1 %v1077_v46  ;;  %v1052_v56 = vmul.f32 %v1530_v49, %v943_v52  ;;  %v1580_v46 = vpop.f32.mrf.mxu1  ;;  %v1008_v52 = vpop.permute.xlu1 %1007 }
 0x1b8   :  { %v1532_v50 = vpop.f32.mrf.mxu0 }
 0x1b9   :  { %v1533_v53 = vadd.f32 %v1532_v50, %v1531_v48 }
 0x1ba   :  { %v1534_v55 = vpop.f32.mrf.mxu0 }
 0x1bb   :  { %v1053_v57 = vmul.f32 %v1533_v53, %v948_v51 }
 0x1bc   :  { %v1535_v58 = vpop.f32.mrf.mxu0 }
 0x1bd   :  { %v1078_v59 = vpack.c.bf16 %v1053_v57, %v1052_v56  ;;  %v1536_v63 = vadd.f32 %v1535_v58, %v1534_v55  ;;  %v1569_v55 = vadd.f32 %v2137_v54, %v2135_v47  ;;  %v1582_v56 = vpop.f32.mrf.mxu1  ;;  %v1003_v58 = vpop.permute.xlu0 %1002  ;;  %v1581_v47 = vadd.f32 %v1580_v46, %v1579_v38 }
 0x1be   :  { %v1537_v61 = vpop.f32.mrf.mxu0 }
 0x1bf   :  { %1640 = vmatprep.mubr.bf16.mxu1 %v1078_v59  ;;  %v1054_v5 = vmul.f32 %v1536_v63, %v953_v1  ;;  %v1583_v1 = vpop.f32.mrf.mxu1 }
 0x1c0   :  { %v1538_v0 = vpop.f32.mrf.mxu0 }
 0x1c1   :  { %v1539_v2 = vadd.f32 %v1538_v0, %v1537_v61  ;;  %v1566_v61 = vadd.f32 %v2133_v41, %v2131_v34  ;;  %v1065_v0 = vmul.f32 %v1569_v55, %v1008_v52  ;;  %v1585_v54 = vpop.f32.mrf.mxu1 }
 0x1c2   :  { %v1540_v4 = vpop.f32.mrf.mxu0 }
 0x1c3   :  { %v1055_v6 = vmul.f32 %v1539_v2, %v958_v62  ;;  %v1018_v2 = vpop.permute.xlu1 %1017 }
 0x1c4   :  { %v1541_v7 = vpop.f32.mrf.mxu0 }
 0x1c5   :  { %v1079_v9 = vpack.c.bf16 %v1055_v6, %v1054_v5  ;;  %v1542_v13 = vadd.f32 %v1541_v7, %v1540_v4  ;;  %v1064_v6 = vmul.f32 %v1566_v61, %v1003_v58  ;;  %v1013_v7 = vpop.permute.xlu0 %1012 }
 0x1c6   :  { %v1543_v11 = vpop.f32.mrf.mxu0 }
 0x1c7   :  { %1641 = vmatmul.mubr.bf16.gmra.mxu1 %v1079_v9  ;;  %v1056_v19 = vmul.f32 %v1542_v13, %v963_v12  ;;  %v1572_v12 = vadd.f32 %v2141_v3, %v2139_v60  ;;  %v1578_v13 = vadd.f32 %v1577_v30, %v1576_v24  ;;  %v1028_v34 = vpop.permute.xlu1 %1027  ;;  %v2152_v24 = vld [vmem:[%s2287_s5] ss:$0 sm:$0xff] }
 0x1c8   :  { %v1544_v14 = vpop.f32.mrf.mxu0 }
 0x1c9   :  { %v1545_v15 = vadd.f32 %v1544_v14, %v1543_v11  ;;  %v1084_v11 = vpack.c.bf16 %v1065_v0, %v1064_v6  ;;  %v1069_v14 = vmul.f32 %v1581_v47, %v1028_v34 }
 0x1ca   :  { %v1546_v17 = vpop.f32.mrf.mxu0 }
 0x1cb   :  { %v1057_v20 = vmul.f32 %v1545_v15, %v968_v8  ;;  %v1575_v8 = vadd.f32 %v1574_v16, %v1573_v10  ;;  %v1586_v15 = vpop.f32.mrf.mxu1  ;;  %v1584_v16 = vadd.f32 %v1583_v1, %v1582_v56 }
 0x1cc   :  { %v1547_v21 = vpop.f32.mrf.mxu0 }
 0x1cd   :  { %v1080_v23 = vpack.c.bf16 %v1057_v20, %v1056_v19  ;;  %v1548_v26 = vadd.f32 %v1547_v21, %v1546_v17  ;;  %v1067_v41 = vmul.f32 %v1575_v8, %v1018_v2  ;;  %v1023_v17 = vpop.permute.xlu0 %1022  ;;  %v1587_v20 = vadd.f32 %v1586_v15, %v1585_v54 }
 0x1ce   :  { %v1549_v25 = vpop.f32.mrf.mxu0  ;;  %v1068_v19 = vmul.f32 %v1578_v13, %v1023_v17 }
 0x1cf   :  { %1644 = vmatprep.mubr.bf16.mxu1 %v1080_v23  ;;  %v1058_v33 = vmul.f32 %v1548_v26, %v973_v22  ;;  %v1038_v22 = vpop.permute.xlu1 %1037 }
 0x1d0   :  { %v1550_v27 = vpop.f32.mrf.mxu0  ;;  %v1086_v10 = vpack.c.bf16 %v1069_v14, %v1068_v19  ;;  %v1071_v23 = vmul.f32 %v1587_v20, %v1038_v22 }
 0x1d1   :  { %v1551_v29 = vadd.f32 %v1550_v27, %v1549_v25  ;;  %v1033_v25 = vpop.permute.xlu0 %1032 }
 0x1d2   :  { %v1552_v31 = vpop.f32.mrf.mxu0  ;;  %v1070_v60 = vmul.f32 %v1584_v16, %v1033_v25 }
 0x1d3   :  { %v1059_v35 = vmul.f32 %v1551_v29, %v978_v18  ;;  %v1066_v18 = vmul.f32 %v1572_v12, %v1013_v7 }
 0x1d4   :  { %v1553_v36 = vpop.f32.mrf.mxu0  ;;  %v1087_v3 = vpack.c.bf16 %v1071_v23, %v1070_v60 }
 0x1d5   :  { %v1081_v37 = vpack.c.bf16 %v1059_v35, %v1058_v33  ;;  %v1554_v42 = vadd.f32 %v1553_v36, %v1552_v31  ;;  %v1085_v21 = vpack.c.bf16 %v1067_v41, %v1066_v18 }
 0x1d6   :  { %v1555_v39 = vpop.f32.mrf.mxu0 }
 0x1d7   :  { %1645 = vmatmul.mubr.bf16.gmra.mxu1 %v1081_v37  ;;  %v1060_v49 = vmul.f32 %v1554_v42, %v983_v32 }
 0x1d8   :  { %v1556_v43 = vpop.f32.mrf.mxu0 }
 0x1d9   :  { %v1557_v45 = vadd.f32 %v1556_v43, %v1555_v39 }
 0x1da   :  { %v1558_v48 = vpop.f32.mrf.mxu0 }
 0x1db   :  { %v1061_v50 = vmul.f32 %v1557_v45, %v988_v28 }
 0x1dc   :  { %v1559_v51 = vpop.f32.mrf.mxu0 }
 0x1dd   :  { %v1082_v53 = vpack.c.bf16 %v1061_v50, %v1060_v49  ;;  %v1560_v59 = vadd.f32 %v1559_v51, %v1558_v48 }
 0x1de   :  { %v1561_v57 = vpop.f32.mrf.mxu0 }
 0x1df   :  { %1648 = vmatprep.mubr.bf16.mxu1 %v1082_v53  ;;  %v1062_v4 = vmul.f32 %v1560_v59, %v993_v44 }
 0x1e0   :  { %v1562_v62 = vpop.f32.mrf.mxu0 }
 0x1e1   :  { %v1563_v63 = vadd.f32 %v1562_v62, %v1561_v57 }
 0x1e3   :  { %v1063_v5 = vmul.f32 %v1563_v63, %v998_v40 }
 0x1e5   :  { %v1083_v9 = vpack.c.bf16 %v1063_v5, %v1062_v4 }
 0x1e7   :  { %1649 = vmatmul.mubr.bf16.gmra.mxu1 %v1083_v9 }
 0x1e8   :  { %1652 = vmatprep.mubr.bf16.mxu1 %v1084_v11 }
 0x1ef   :  { %1653 = vmatmul.mubr.bf16.gmra.mxu1 %v1085_v21 }
 0x1f0   :  { %1656 = vmatprep.mubr.bf16.mxu1 %v1086_v10 }
 0x1f7   :  { %1657 = vmatmul.mubr.bf16.gmra.mxu1 %v1087_v3 }
 0x257   :  { %v1630_v26 = vpop.f32.mrf.mxu1 }
 0x258   :  { %v1202_v27 = vadd.f32 %v1630_v26, %v2152_v24 }
 0x259   :  { %v1193_v28 = vpop.f32.mrf.mxu1 }
 0x25a   :  { %1322 = vst [vmem:[%s2288_s6 + $0x10] sm:$0xff] %v1202_v27  ;;  %v1194_v29 = vadd.f32 %v2152_v24, %v1193_v28 }
 0x25b   :  { %v1631_v30 = vpop.f32.mrf.mxu1 }
 0x25c   :  { %1320 = vst [vmem:[%s2288_s6] sm:$0xff] %v1194_v29  ;;  %v1205_v31 = vadd.f32 %v1631_v30, %v2152_v24 }
 0x25d   :  { %v1196_v32 = vpop.f32.mrf.mxu1 }
 0x25e   :  { %1323 = vst [vmem:[%s2288_s6 + $0x18] sm:$0xff] %v1205_v31  ;;  %v1197_v33 = vadd.f32 %v2152_v24, %v1196_v32 }
 0x260   :  { %1321 = vst [vmem:[%s2288_s6 + $0x8] sm:$0xff] %v1197_v33 }
 0x267   :  { %v1634_v35 = vpop.f32.mrf.mxu1 }
 0x268   :  { %v1218_v36 = vadd.f32 %v1634_v35, %v2152_v24 }
 0x269   :  { %v1209_v37 = vpop.f32.mrf.mxu1 }
 0x26a   :  { %1326 = vst [vmem:[%s2288_s6 + $0x30] sm:$0xff] %v1218_v36  ;;  %v1210_v38 = vadd.f32 %v2152_v24, %v1209_v37 }
 0x26b   :  { %v1635_v39 = vpop.f32.mrf.mxu1 }
 0x26c   :  { %1324 = vst [vmem:[%s2288_s6 + $0x20] sm:$0xff] %v1210_v38  ;;  %v1221_v40 = vadd.f32 %v1635_v39, %v2152_v24 }
 0x26d   :  { %v1212_v42 = vpop.f32.mrf.mxu1 }
 0x26e   :  { %1327 = vst [vmem:[%s2288_s6 + $0x38] sm:$0xff] %v1221_v40  ;;  %v1213_v43 = vadd.f32 %v2152_v24, %v1212_v42 }
 0x270   :  { %1325 = vst [vmem:[%s2288_s6 + $0x28] sm:$0xff] %v1213_v43 }
 0x277   :  { %v1638_v44 = vpop.f32.mrf.mxu1 }
 0x278   :  { %v1234_v45 = vadd.f32 %v1638_v44, %v2152_v24 }
 0x279   :  { %v1225_v46 = vpop.f32.mrf.mxu1 }
 0x27a   :  { %1330 = vst [vmem:[%s2288_s6 + $0x50] sm:$0xff] %v1234_v45  ;;  %v1226_v48 = vadd.f32 %v2152_v24, %v1225_v46 }
 0x27b   :  { %v1639_v49 = vpop.f32.mrf.mxu1 }
 0x27c   :  { %1328 = vst [vmem:[%s2288_s6 + $0x40] sm:$0xff] %v1226_v48  ;;  %v1237_v50 = vadd.f32 %v1639_v49, %v2152_v24 }
 0x27d   :  { %v1228_v51 = vpop.f32.mrf.mxu1 }
 0x27e   :  { %1331 = vst [vmem:[%s2288_s6 + $0x58] sm:$0xff] %v1237_v50  ;;  %v1229_v52 = vadd.f32 %v2152_v24, %v1228_v51 }
 0x280   :  { %1329 = vst [vmem:[%s2288_s6 + $0x48] sm:$0xff] %v1229_v52 }
 0x287   :  { %v1642_v53 = vpop.f32.mrf.mxu1 }
 0x288   :  { %v1250_v55 = vadd.f32 %v1642_v53, %v2152_v24 }
 0x289   :  { %v1241_v56 = vpop.f32.mrf.mxu1 }
 0x28a   :  { %1334 = vst [vmem:[%s2288_s6 + $0x70] sm:$0xff] %v1250_v55  ;;  %v1242_v57 = vadd.f32 %v2152_v24, %v1241_v56 }
 0x28b   :  { %v1643_v58 = vpop.f32.mrf.mxu1 }
 0x28c   :  { %1332 = vst [vmem:[%s2288_s6 + $0x60] sm:$0xff] %v1242_v57  ;;  %v1253_v59 = vadd.f32 %v1643_v58, %v2152_v24 }
 0x28d   :  { %v1244_v61 = vpop.f32.mrf.mxu1 }
 0x28e   :  { %1335 = vst [vmem:[%s2288_s6 + $0x78] sm:$0xff] %v1253_v59  ;;  %v1245_v62 = vadd.f32 %v2152_v24, %v1244_v61 }
 0x290   :  { %1333 = vst [vmem:[%s2288_s6 + $0x68] sm:$0xff] %v1245_v62 }
 0x297   :  { %v1646_v63 = vpop.f32.mrf.mxu1 }
 0x298   :  { %v1266_v0 = vadd.f32 %v1646_v63, %v2152_v24 }
 0x299   :  { %v1257_v1 = vpop.f32.mrf.mxu1 }
 0x29a   :  { %1338 = vst [vmem:[%s2288_s6 + $0x90] sm:$0xff] %v1266_v0  ;;  %v1258_v2 = vadd.f32 %v2152_v24, %v1257_v1 }
 0x29b   :  { %v1647_v4 = vpop.f32.mrf.mxu1 }
 0x29c   :  { %1336 = vst [vmem:[%s2288_s6 + $0x80] sm:$0xff] %v1258_v2  ;;  %v1269_v5 = vadd.f32 %v1647_v4, %v2152_v24 }
 0x29d   :  { %v1260_v6 = vpop.f32.mrf.mxu1 }
 0x29e   :  { %1339 = vst [vmem:[%s2288_s6 + $0x98] sm:$0xff] %v1269_v5  ;;  %v1261_v7 = vadd.f32 %v2152_v24, %v1260_v6 }
 0x2a0   :  { %1337 = vst [vmem:[%s2288_s6 + $0x88] sm:$0xff] %v1261_v7 }
 0x2a7   :  { %v1650_v8 = vpop.f32.mrf.mxu1 }
 0x2a8   :  { %v1282_v9 = vadd.f32 %v1650_v8, %v2152_v24 }
 0x2a9   :  { %v1273_v47 = vpop.f32.mrf.mxu1 }
 0x2aa   :  { %1342 = vst [vmem:[%s2288_s6 + $0xb0] sm:$0xff] %v1282_v9  ;;  %v1274_v54 = vadd.f32 %v2152_v24, %v1273_v47 }
 0x2ab   :  { %v1651_v11 = vpop.f32.mrf.mxu1 }
 0x2ac   :  { %1340 = vst [vmem:[%s2288_s6 + $0xa0] sm:$0xff] %v1274_v54  ;;  %v1285_v12 = vadd.f32 %v1651_v11, %v2152_v24 }
 0x2ad   :  { %v1276_v13 = vpop.f32.mrf.mxu1 }
 0x2ae   :  { %1343 = vst [vmem:[%s2288_s6 + $0xb8] sm:$0xff] %v1285_v12  ;;  %v1277_v34 = vadd.f32 %v2152_v24, %v1276_v13 }
 0x2af   :  { %v1654_v41 = vpop.f32.mrf.mxu1 }
 0x2b0   :  { %1341 = vst [vmem:[%s2288_s6 + $0xa8] sm:$0xff] %v1277_v34  ;;  %v1298_v14 = vadd.f32 %v1654_v41, %v2152_v24 }
 0x2b1   :  { %v1289_v15 = vpop.f32.mrf.mxu1 }
 0x2b2   :  { %1346 = vst [vmem:[%s2288_s6 + $0xd0] sm:$0xff] %v1298_v14  ;;  %v1290_v17 = vadd.f32 %v2152_v24, %v1289_v15 }
 0x2b3   :  { %v1655_v18 = vpop.f32.mrf.mxu1 }
 0x2b4   :  { %1344 = vst [vmem:[%s2288_s6 + $0xc0] sm:$0xff] %v1290_v17  ;;  %v1301_v19 = vadd.f32 %v1655_v18, %v2152_v24 }
 0x2b5   :  { %v1292_v20 = vpop.f32.mrf.mxu1 }
 0x2b6   :  { %1347 = vst [vmem:[%s2288_s6 + $0xd8] sm:$0xff] %v1301_v19  ;;  %v1293_v21 = vadd.f32 %v2152_v24, %v1292_v20 }
 0x2b7   :  { %v1658_v10 = vpop.f32.mrf.mxu1 }
 0x2b8   :  { %1345 = vst [vmem:[%s2288_s6 + $0xc8] sm:$0xff] %v1293_v21  ;;  %v1314_v16 = vadd.f32 %v1658_v10, %v2152_v24 }
 0x2b9   :  { %v1305_v22 = vpop.f32.mrf.mxu1 }
 0x2ba   :  { %1350 = vst [vmem:[%s2288_s6 + $0xf0] sm:$0xff] %v1314_v16  ;;  %v1306_v23 = vadd.f32 %v2152_v24, %v1305_v22 }
 0x2bb   :  { %v1659_v25 = vpop.f32.mrf.mxu1 }
 0x2bc   :  { %1348 = vst [vmem:[%s2288_s6 + $0xe0] sm:$0xff] %v1306_v23  ;;  %v1317_v60 = vadd.f32 %v1659_v25, %v2152_v24 }
 0x2bd   :  { %v1308_v3 = vpop.f32.mrf.mxu1 }
 0x2be   :  { %1351 = vst [vmem:[%s2288_s6 + $0xf8] sm:$0xff] %v1317_v60  ;;  %v1309_v26 = vadd.f32 %v2152_v24, %v1308_v3 }
 0x2c0   :  { %1349 = vst [vmem:[%s2288_s6 + $0xe8] sm:$0xff] %v1309_v26 }

</bundles_post_ra>
